<compile_context>
chip_gen: v7x
topology: tpu7x:2x2x1
jax: 0.10.0
libtpu: 0.0.40
codegen_flags: <defaults>
</compile_context>

<pallas_src>
import functools

import jax
import jax.numpy as jnp
from jax import lax
from jax.experimental import pallas as pl
from jax.experimental.pallas import tpu as pltpu


def _round_up(x, m):
    return ((x + m - 1) // m) * m


# ---------------------------------------------------------------------------
# Pallas kernel: whole sequence in one invocation.
# ---------------------------------------------------------------------------
def mil_kernel(
    x_ref,      # (T*Bp, Dp)    time-major inputs, flattened (t, b) rows
    wi_ref,     # (Dp, 3*Hp)    [W_ir | W_iz | W_in], each lane-padded to Hp
    wh_ref,     # (Hp, 3*Hp)    [W_hr | W_hz | W_hn]
    bg_ref,     # (2, 3*Hp)     row 0 = [b_ir|b_iz|b_in], row 1 = [b_hr|b_hz|b_hn]
    wfc_ref,    # (Hp, Fp)
    bfc_ref,    # (1, Fp)
    wout_ref,   # (Fp, Op)
    bout_ref,   # (1, Op)
    out_ref,    # (Bp, Op)
    xw_scr,     # scratch (T*Bp, 3*Hp): hoisted input projections
    *,
    seq_len, batch_p, hidden_p, fc_p, out_p,
):
    T, Bp, Hp, Fp, Op = seq_len, batch_p, hidden_p, fc_p, out_p

    # ---- Hoisted input projection for all timesteps (no h dependence). ----
    bi = bg_ref[0:1, :]                                        # (1, 3*Hp)
    xw_scr[...] = (
        jnp.dot(x_ref[...], wi_ref[...], preferred_element_type=jnp.float32)
        + bi
    )

    # Hoist loop-invariant loads / broadcasts out of the recurrence.
    bh_b = jnp.broadcast_to(bg_ref[1:2, :], (Bp, 3 * Hp))      # (Bp, 3*Hp)
    bfc_b = jnp.broadcast_to(bfc_ref[...], (Bp, Fp))           # (Bp, Fp)
    wh = wh_ref[...]
    wfc = wfc_ref[...]
    wout = wout_ref[...]

    def step(t, carry):
        h, logit_max = carry
        start = pl.multiple_of(t * Bp, Bp)
        gx = xw_scr[pl.ds(start, Bp), :]                       # (Bp, 3*Hp)
        gh = jnp.dot(h, wh, preferred_element_type=jnp.float32) + bh_b

        # PyTorch GRU gate math (r, z, n order); gate blocks are 128-aligned.
        r = jax.nn.sigmoid(gx[:, 0:Hp] + gh[:, 0:Hp])
        z = jax.nn.sigmoid(gx[:, Hp:2 * Hp] + gh[:, Hp:2 * Hp])
        n = jnp.tanh(gx[:, 2 * Hp:3 * Hp] + r * gh[:, 2 * Hp:3 * Hp])
        h_new = (1.0 - z) * n + z * h

        fc = jnp.tanh(
            jnp.dot(h_new, wfc, preferred_element_type=jnp.float32) + bfc_b)
        logit = jnp.dot(fc, wout, preferred_element_type=jnp.float32)
        return h_new, jnp.maximum(logit_max, logit)

    h0 = jnp.zeros((Bp, Hp), jnp.float32)
    lmax0 = jnp.full((Bp, Op), -jnp.inf, jnp.float32)
    _, logit_max = lax.fori_loop(0, T, step, (h0, lmax0), unroll=True)

    # sigmoid is monotonic: max_t sigmoid(l_t + b) == sigmoid(max_t l_t + b).
    out_ref[...] = jax.nn.sigmoid(logit_max + bout_ref[...])


# ---------------------------------------------------------------------------
# Wrapper: pad / pack parameters, launch one pallas_call, slice padding off.
# ---------------------------------------------------------------------------
def mil_forward(x, params):
    """x: (seq_len, batch, in_dim) float32. Returns p_max: (batch, out_dim)."""
    T, B, in_dim = x.shape
    H = params["whr"].shape[0]
    F = params["wfc"].shape[1]
    O = params["wout"].shape[1]

    Bp = _round_up(B, 8)
    Dp = _round_up(in_dim, 128)
    Hp = _round_up(H, 128)
    Fp = _round_up(F, 128)
    Op = _round_up(O, 128)

    def pad2(a, rows, cols):
        return jnp.pad(a, ((0, rows - a.shape[0]), (0, cols - a.shape[1])))

    # Concatenated gate weights/biases (r, z, n); each gate block padded to Hp
    # so the in-kernel lane slices are 128-aligned.
    wi_cat = jnp.concatenate(
        [pad2(params["wir"], Dp, Hp), pad2(params["wiz"], Dp, Hp),
         pad2(params["win"], Dp, Hp)], axis=1)                  # (Dp, 3*Hp)
    wh_cat = jnp.concatenate(
        [pad2(params["whr"], Hp, Hp), pad2(params["whz"], Hp, Hp),
         pad2(params["whn"], Hp, Hp)], axis=1)                  # (Hp, 3*Hp)
    bi_cat = jnp.concatenate(
        [pad2(params["bir"], 1, Hp), pad2(params["biz"], 1, Hp),
         pad2(params["bin"], 1, Hp)], axis=1)                   # (1, 3*Hp)
    bh_cat = jnp.concatenate(
        [pad2(params["bhr"], 1, Hp), pad2(params["bhz"], 1, Hp),
         pad2(params["bhn"], 1, Hp)], axis=1)                   # (1, 3*Hp)
    bg = jnp.concatenate([bi_cat, bh_cat], axis=0)              # (2, 3*Hp)

    wfc_p = pad2(params["wfc"], Hp, Fp)
    bfc_p = pad2(params["bfc"], 1, Fp)
    wout_p = pad2(params["wout"], Fp, Op)
    bout_p = pad2(params["bout"], 1, Op)

    # Pad batch to a sublane multiple and in_dim to a lane multiple; flatten
    # (t, b) into rows so timestep t lives at rows [t*Bp, (t+1)*Bp).
    x_p = jnp.pad(x, ((0, 0), (0, Bp - B), (0, Dp - in_dim)))
    x2d = x_p.reshape(T * Bp, Dp).astype(jnp.float32)

    vmem = pl.BlockSpec(memory_space=pltpu.MemorySpace.VMEM)

    out = pl.pallas_call(
        functools.partial(
            mil_kernel,
            seq_len=T, batch_p=Bp, hidden_p=Hp, fc_p=Fp, out_p=Op),
        out_shape=jax.ShapeDtypeStruct((Bp, Op), jnp.float32),
        in_specs=[vmem] * 8,
        out_specs=vmem,
        scratch_shapes=[pltpu.VMEM((T * Bp, 3 * Hp), jnp.float32)],
    )(x2d, wi_cat, wh_cat, bg, wfc_p, bfc_p, wout_p, bout_p)

    return out[:B, :O]


# ---------------------------------------------------------------------------
# Pure-JAX reference (for correctness checking)
# ---------------------------------------------------------------------------
def mil_reference(x, params):
    _, batch, _ = x.shape
    H = params["whr"].shape[0]

    def step(h, x_t):
        r = jax.nn.sigmoid(x_t @ params["wir"] + params["bir"]
                           + h @ params["whr"] + params["bhr"])
        z = jax.nn.sigmoid(x_t @ params["wiz"] + params["biz"]
                           + h @ params["whz"] + params["bhz"])
        n = jnp.tanh(x_t @ params["win"] + params["bin"]
                     + r * (h @ params["whn"] + params["bhn"]))
        h_new = (1.0 - z) * n + z * h
        return h_new, h_new

    h0 = jnp.zeros((batch, H), jnp.float32)
    _, outs = lax.scan(step, h0, x)                            # (T, B, H)
    fc = jnp.tanh(outs @ params["wfc"] + params["bfc"])
    p = jax.nn.sigmoid(fc @ params["wout"] + params["bout"])   # (T, B, O)
    # torch.max(out_p, 1)[0] after transpose(0, 1) == max over the seq axis.
    return jnp.max(p, axis=0)                                  # (B, O)


# ---------------------------------------------------------------------------
# Deterministic parameter init (PyTorch layer shapes; synthetic values)
# ---------------------------------------------------------------------------
def init_params(key, in_dim, rnn_hidden, fc_hidden, out_dim):
    keys = jax.random.split(key, 16)
    s_rnn = 1.0 / jnp.sqrt(rnn_hidden)
    s_fc = 1.0 / jnp.sqrt(rnn_hidden)
    s_out = 1.0 / jnp.sqrt(fc_hidden)

    def u(k, shape, s):
        return jax.random.uniform(k, shape, jnp.float32, -s, s)

    return {
        "wir": u(keys[0], (in_dim, rnn_hidden), s_rnn),
        "wiz": u(keys[1], (in_dim, rnn_hidden), s_rnn),
        "win": u(keys[2], (in_dim, rnn_hidden), s_rnn),
        "whr": u(keys[3], (rnn_hidden, rnn_hidden), s_rnn),
        "whz": u(keys[4], (rnn_hidden, rnn_hidden), s_rnn),
        "whn": u(keys[5], (rnn_hidden, rnn_hidden), s_rnn),
        "bir": u(keys[6], (1, rnn_hidden), s_rnn),
        "biz": u(keys[7], (1, rnn_hidden), s_rnn),
        "bin": u(keys[8], (1, rnn_hidden), s_rnn),
        "bhr": u(keys[9], (1, rnn_hidden), s_rnn),
        "bhz": u(keys[10], (1, rnn_hidden), s_rnn),
        "bhn": u(keys[11], (1, rnn_hidden), s_rnn),
        "wfc": u(keys[12], (rnn_hidden, fc_hidden), s_fc),
        "bfc": u(keys[13], (1, fc_hidden), s_fc),
        "wout": u(keys[14], (fc_hidden, out_dim), s_out),
        "bout": u(keys[15], (1, out_dim), s_out),
    }


if __name__ == "__main__":
    # Small shapes consistent with the module (in_dim=1, out_dim=1).
    seq_len, batch = 8, 4
    in_dim, rnn_hidden, fc_hidden, out_dim = 1, 20, 64, 1

    key = jax.random.PRNGKey(0)
    kx, kp = jax.random.split(key)
    x = jax.random.normal(kx, (seq_len, batch, in_dim), jnp.float32)
    params = init_params(kp, in_dim, rnn_hidden, fc_hidden, out_dim)

    p_max = jax.block_until_ready(mil_forward(x, params))
    p_ref = jax.block_until_ready(mil_reference(x, params))

    assert p_max.shape == (batch, out_dim)
    assert jnp.allclose(p_max, p_ref, atol=1e-5, rtol=1e-5), (p_max, p_ref)

    print("KERNEL_OK")
</pallas_src>

<mosaic_0001>
module attributes {stable_mosaic.version = 11 : i64} {
  func.func @mil_kernel(%arg0: memref<64x128xf32, #tpu.memory_space<vmem>>, %arg1: memref<128x384xf32, #tpu.memory_space<vmem>>, %arg2: memref<128x384xf32, #tpu.memory_space<vmem>>, %arg3: memref<2x384xf32, #tpu.memory_space<vmem>>, %arg4: memref<128x128xf32, #tpu.memory_space<vmem>>, %arg5: memref<1x128xf32, #tpu.memory_space<vmem>>, %arg6: memref<128x128xf32, #tpu.memory_space<vmem>>, %arg7: memref<1x128xf32, #tpu.memory_space<vmem>>, %arg8: memref<8x128xf32, #tpu.memory_space<vmem>>, %arg9: memref<64x384xf32, #tpu.memory_space<vmem>>) attributes {dimension_semantics = [], scalar_prefetch = 0 : i64, scratch_operands = 1 : i64, tpu.core_type = #tpu.core_type<tc>} {
    %c0 = arith.constant 0 : index
    %c0_0 = arith.constant 0 : index
    %0 = vector.load %arg3[%c0, %c0_0] : memref<2x384xf32, #tpu.memory_space<vmem>>, vector<1x384xf32>
    %c0_1 = arith.constant 0 : index
    %c0_2 = arith.constant 0 : index
    %1 = vector.load %arg0[%c0_1, %c0_2] : memref<64x128xf32, #tpu.memory_space<vmem>>, vector<64x128xf32>
    %c0_3 = arith.constant 0 : index
    %c0_4 = arith.constant 0 : index
    %2 = vector.load %arg1[%c0_3, %c0_4] : memref<128x384xf32, #tpu.memory_space<vmem>>, vector<128x384xf32>
    %cst = arith.constant dense<0.000000e+00> : vector<64x384xf32>
    %3 = tpu.matmul %1, %2, %cst {dimension_numbers = #tpu.dot_dimension_numbers<[1], [0], [0], [1], [0, 0, 1, 1], [], []>} : vector<64x128xf32>, vector<128x384xf32>, vector<64x384xf32> -> vector<64x384xf32>
    %4 = vector.broadcast %0 : vector<1x384xf32> to vector<64x384xf32>
    %5 = arith.addf %3, %4 : vector<64x384xf32>
    %c0_5 = arith.constant 0 : index
    %c0_6 = arith.constant 0 : index
    %6 = vector.load %arg9[%c0_5, %c0_6] : memref<64x384xf32, #tpu.memory_space<vmem>>, vector<64x384xf32>
    tpu.vector_store %arg9[%c0_5, %c0_6], %5 {strides = array<i32>} : memref<64x384xf32, #tpu.memory_space<vmem>>, vector<64x384xf32>,
    %c1 = arith.constant 1 : index
    %c0_7 = arith.constant 0 : index
    %7 = vector.load %arg3[%c1, %c0_7] : memref<2x384xf32, #tpu.memory_space<vmem>>, vector<1x384xf32>
    %8 = vector.shape_cast %7 : vector<1x384xf32> to vector<1x384xf32>
    %9 = vector.broadcast %8 : vector<1x384xf32> to vector<8x384xf32>
    %c0_8 = arith.constant 0 : index
    %c0_9 = arith.constant 0 : index
    %10 = vector.load %arg5[%c0_8, %c0_9] : memref<1x128xf32, #tpu.memory_space<vmem>>, vector<1x128xf32>
    %11 = vector.shape_cast %10 : vector<1x128xf32> to vector<1x128xf32>
    %12 = vector.broadcast %11 : vector<1x128xf32> to vector<8x128xf32>
    %c0_10 = arith.constant 0 : index
    %c0_11 = arith.constant 0 : index
    %13 = vector.load %arg2[%c0_10, %c0_11] : memref<128x384xf32, #tpu.memory_space<vmem>>, vector<128x384xf32>
    %c0_12 = arith.constant 0 : index
    %c0_13 = arith.constant 0 : index
    %14 = vector.load %arg4[%c0_12, %c0_13] : memref<128x128xf32, #tpu.memory_space<vmem>>, vector<128x128xf32>
    %c0_14 = arith.constant 0 : index
    %c0_15 = arith.constant 0 : index
    %15 = vector.load %arg6[%c0_14, %c0_15] : memref<128x128xf32, #tpu.memory_space<vmem>>, vector<128x128xf32>
    %cst_16 = arith.constant 0.000000e+00 : f32
    %16 = vector.broadcast %cst_16 : f32 to vector<8x128xf32>
    %cst_17 = arith.constant 0xFF800000 : f32
    %17 = vector.broadcast %cst_17 : f32 to vector<8x128xf32>
    %c0_i32 = arith.constant 0 : i32
    %c8_i32 = arith.constant 8 : i32
    %18 = arith.muli %c0_i32, %c8_i32 : i32
    %19 = tpu.assume_multiple %18, 8 : i32
    %20 = arith.index_cast %19 : i32 to index
    %c0_18 = arith.constant 0 : index
    %21 = vector.load %arg9[%20, %c0_18] : memref<64x384xf32, #tpu.memory_space<vmem>>, vector<8x384xf32>
    %cst_19 = arith.constant dense<0.000000e+00> : vector<8x384xf32>
    %22 = tpu.matmul %16, %13, %cst_19 {dimension_numbers = #tpu.dot_dimension_numbers<[1], [0], [0], [1], [0, 0, 1, 1], [], []>} : vector<8x128xf32>, vector<128x384xf32>, vector<8x384xf32> -> vector<8x384xf32>
    %23 = arith.addf %22, %9 : vector<8x384xf32>
    %24 = vector.extract_strided_slice %21 {offsets = [0, 0], sizes = [8, 128], strides = [1, 1]} : vector<8x384xf32> to vector<8x128xf32>
    %25 = vector.extract_strided_slice %23 {offsets = [0, 0], sizes = [8, 128], strides = [1, 1]} : vector<8x384xf32> to vector<8x128xf32>
    %26 = arith.addf %24, %25 : vector<8x128xf32>
    %27 = arith.negf %26 : vector<8x128xf32>
    %28 = math.exp %27 : vector<8x128xf32>
    %cst_20 = arith.constant 1.000000e+00 : f32
    %29 = vector.broadcast %cst_20 : f32 to vector<8x128xf32>
    %30 = arith.addf %29, %28 : vector<8x128xf32>
    %31 = arith.divf %29, %30 : vector<8x128xf32>
    %32 = vector.extract_strided_slice %21 {offsets = [0, 128], sizes = [8, 128], strides = [1, 1]} : vector<8x384xf32> to vector<8x128xf32>
    %33 = vector.extract_strided_slice %23 {offsets = [0, 128], sizes = [8, 128], strides = [1, 1]} : vector<8x384xf32> to vector<8x128xf32>
    %34 = arith.addf %32, %33 : vector<8x128xf32>
    %35 = arith.negf %34 : vector<8x128xf32>
    %36 = math.exp %35 : vector<8x128xf32>
    %cst_21 = arith.constant 1.000000e+00 : f32
    %37 = vector.broadcast %cst_21 : f32 to vector<8x128xf32>
    %38 = arith.addf %37, %36 : vector<8x128xf32>
    %39 = arith.divf %37, %38 : vector<8x128xf32>
    %40 = vector.extract_strided_slice %21 {offsets = [0, 256], sizes = [8, 128], strides = [1, 1]} : vector<8x384xf32> to vector<8x128xf32>
    %41 = vector.extract_strided_slice %23 {offsets = [0, 256], sizes = [8, 128], strides = [1, 1]} : vector<8x384xf32> to vector<8x128xf32>
    %42 = arith.mulf %31, %41 : vector<8x128xf32>
    %43 = arith.addf %40, %42 : vector<8x128xf32>
    %44 = math.tanh %43 : vector<8x128xf32>
    %cst_22 = arith.constant 1.000000e+00 : f32
    %45 = vector.broadcast %cst_22 : f32 to vector<8x128xf32>
    %46 = arith.subf %45, %39 : vector<8x128xf32>
    %47 = arith.mulf %46, %44 : vector<8x128xf32>
    %48 = arith.mulf %39, %16 : vector<8x128xf32>
    %49 = arith.addf %47, %48 : vector<8x128xf32>
    %cst_23 = arith.constant dense<0.000000e+00> : vector<8x128xf32>
    %50 = tpu.matmul %49, %14, %cst_23 {dimension_numbers = #tpu.dot_dimension_numbers<[1], [0], [0], [1], [0, 0, 1, 1], [], []>} : vector<8x128xf32>, vector<128x128xf32>, vector<8x128xf32> -> vector<8x128xf32>
    %51 = arith.addf %50, %12 : vector<8x128xf32>
    %52 = math.tanh %51 : vector<8x128xf32>
    %cst_24 = arith.constant dense<0.000000e+00> : vector<8x128xf32>
    %53 = tpu.matmul %52, %15, %cst_24 {dimension_numbers = #tpu.dot_dimension_numbers<[1], [0], [0], [1], [0, 0, 1, 1], [], []>} : vector<8x128xf32>, vector<128x128xf32>, vector<8x128xf32> -> vector<8x128xf32>
    %54 = arith.maximumf %17, %53 : vector<8x128xf32>
    %c1_i32 = arith.constant 1 : i32
    %c8_i32_25 = arith.constant 8 : i32
    %55 = arith.muli %c1_i32, %c8_i32_25 : i32
    %56 = tpu.assume_multiple %55, 8 : i32
    %57 = arith.index_cast %56 : i32 to index
    %c0_26 = arith.constant 0 : index
    %58 = vector.load %arg9[%57, %c0_26] : memref<64x384xf32, #tpu.memory_space<vmem>>, vector<8x384xf32>
    %cst_27 = arith.constant dense<0.000000e+00> : vector<8x384xf32>
    %59 = tpu.matmul %49, %13, %cst_27 {dimension_numbers = #tpu.dot_dimension_numbers<[1], [0], [0], [1], [0, 0, 1, 1], [], []>} : vector<8x128xf32>, vector<128x384xf32>, vector<8x384xf32> -> vector<8x384xf32>
    %60 = arith.addf %59, %9 : vector<8x384xf32>
    %61 = vector.extract_strided_slice %58 {offsets = [0, 0], sizes = [8, 128], strides = [1, 1]} : vector<8x384xf32> to vector<8x128xf32>
    %62 = vector.extract_strided_slice %60 {offsets = [0, 0], sizes = [8, 128], strides = [1, 1]} : vector<8x384xf32> to vector<8x128xf32>
    %63 = arith.addf %61, %62 : vector<8x128xf32>
    %64 = arith.negf %63 : vector<8x128xf32>
    %65 = math.exp %64 : vector<8x128xf32>
    %cst_28 = arith.constant 1.000000e+00 : f32
    %66 = vector.broadcast %cst_28 : f32 to vector<8x128xf32>
    %67 = arith.addf %66, %65 : vector<8x128xf32>
    %68 = arith.divf %66, %67 : vector<8x128xf32>
    %69 = vector.extract_strided_slice %58 {offsets = [0, 128], sizes = [8, 128], strides = [1, 1]} : vector<8x384xf32> to vector<8x128xf32>
    %70 = vector.extract_strided_slice %60 {offsets = [0, 128], sizes = [8, 128], strides = [1, 1]} : vector<8x384xf32> to vector<8x128xf32>
    %71 = arith.addf %69, %70 : vector<8x128xf32>
    %72 = arith.negf %71 : vector<8x128xf32>
    %73 = math.exp %72 : vector<8x128xf32>
    %cst_29 = arith.constant 1.000000e+00 : f32
    %74 = vector.broadcast %cst_29 : f32 to vector<8x128xf32>
    %75 = arith.addf %74, %73 : vector<8x128xf32>
    %76 = arith.divf %74, %75 : vector<8x128xf32>
    %77 = vector.extract_strided_slice %58 {offsets = [0, 256], sizes = [8, 128], strides = [1, 1]} : vector<8x384xf32> to vector<8x128xf32>
    %78 = vector.extract_strided_slice %60 {offsets = [0, 256], sizes = [8, 128], strides = [1, 1]} : vector<8x384xf32> to vector<8x128xf32>
    %79 = arith.mulf %68, %78 : vector<8x128xf32>
    %80 = arith.addf %77, %79 : vector<8x128xf32>
    %81 = math.tanh %80 : vector<8x128xf32>
    %cst_30 = arith.constant 1.000000e+00 : f32
    %82 = vector.broadcast %cst_30 : f32 to vector<8x128xf32>
    %83 = arith.subf %82, %76 : vector<8x128xf32>
    %84 = arith.mulf %83, %81 : vector<8x128xf32>
    %85 = arith.mulf %76, %49 : vector<8x128xf32>
    %86 = arith.addf %84, %85 : vector<8x128xf32>
    %cst_31 = arith.constant dense<0.000000e+00> : vector<8x128xf32>
    %87 = tpu.matmul %86, %14, %cst_31 {dimension_numbers = #tpu.dot_dimension_numbers<[1], [0], [0], [1], [0, 0, 1, 1], [], []>} : vector<8x128xf32>, vector<128x128xf32>, vector<8x128xf32> -> vector<8x128xf32>
    %88 = arith.addf %87, %12 : vector<8x128xf32>
    %89 = math.tanh %88 : vector<8x128xf32>
    %cst_32 = arith.constant dense<0.000000e+00> : vector<8x128xf32>
    %90 = tpu.matmul %89, %15, %cst_32 {dimension_numbers = #tpu.dot_dimension_numbers<[1], [0], [0], [1], [0, 0, 1, 1], [], []>} : vector<8x128xf32>, vector<128x128xf32>, vector<8x128xf32> -> vector<8x128xf32>
    %91 = arith.maximumf %54, %90 : vector<8x128xf32>
    %c2_i32 = arith.constant 2 : i32
    %c8_i32_33 = arith.constant 8 : i32
    %92 = arith.muli %c2_i32, %c8_i32_33 : i32
    %93 = tpu.assume_multiple %92, 8 : i32
    %94 = arith.index_cast %93 : i32 to index
    %c0_34 = arith.constant 0 : index
    %95 = vector.load %arg9[%94, %c0_34] : memref<64x384xf32, #tpu.memory_space<vmem>>, vector<8x384xf32>
    %cst_35 = arith.constant dense<0.000000e+00> : vector<8x384xf32>
    %96 = tpu.matmul %86, %13, %cst_35 {dimension_numbers = #tpu.dot_dimension_numbers<[1], [0], [0], [1], [0, 0, 1, 1], [], []>} : vector<8x128xf32>, vector<128x384xf32>, vector<8x384xf32> -> vector<8x384xf32>
    %97 = arith.addf %96, %9 : vector<8x384xf32>
    %98 = vector.extract_strided_slice %95 {offsets = [0, 0], sizes = [8, 128], strides = [1, 1]} : vector<8x384xf32> to vector<8x128xf32>
    %99 = vector.extract_strided_slice %97 {offsets = [0, 0], sizes = [8, 128], strides = [1, 1]} : vector<8x384xf32> to vector<8x128xf32>
    %100 = arith.addf %98, %99 : vector<8x128xf32>
    %101 = arith.negf %100 : vector<8x128xf32>
    %102 = math.exp %101 : vector<8x128xf32>
    %cst_36 = arith.constant 1.000000e+00 : f32
    %103 = vector.broadcast %cst_36 : f32 to vector<8x128xf32>
    %104 = arith.addf %103, %102 : vector<8x128xf32>
    %105 = arith.divf %103, %104 : vector<8x128xf32>
    %106 = vector.extract_strided_slice %95 {offsets = [0, 128], sizes = [8, 128], strides = [1, 1]} : vector<8x384xf32> to vector<8x128xf32>
    %107 = vector.extract_strided_slice %97 {offsets = [0, 128], sizes = [8, 128], strides = [1, 1]} : vector<8x384xf32> to vector<8x128xf32>
    %108 = arith.addf %106, %107 : vector<8x128xf32>
    %109 = arith.negf %108 : vector<8x128xf32>
    %110 = math.exp %109 : vector<8x128xf32>
    %cst_37 = arith.constant 1.000000e+00 : f32
    %111 = vector.broadcast %cst_37 : f32 to vector<8x128xf32>
    %112 = arith.addf %111, %110 : vector<8x128xf32>
    %113 = arith.divf %111, %112 : vector<8x128xf32>
    %114 = vector.extract_strided_slice %95 {offsets = [0, 256], sizes = [8, 128], strides = [1, 1]} : vector<8x384xf32> to vector<8x128xf32>
    %115 = vector.extract_strided_slice %97 {offsets = [0, 256], sizes = [8, 128], strides = [1, 1]} : vector<8x384xf32> to vector<8x128xf32>
    %116 = arith.mulf %105, %115 : vector<8x128xf32>
    %117 = arith.addf %114, %116 : vector<8x128xf32>
    %118 = math.tanh %117 : vector<8x128xf32>
    %cst_38 = arith.constant 1.000000e+00 : f32
    %119 = vector.broadcast %cst_38 : f32 to vector<8x128xf32>
    %120 = arith.subf %119, %113 : vector<8x128xf32>
    %121 = arith.mulf %120, %118 : vector<8x128xf32>
    %122 = arith.mulf %113, %86 : vector<8x128xf32>
    %123 = arith.addf %121, %122 : vector<8x128xf32>
    %cst_39 = arith.constant dense<0.000000e+00> : vector<8x128xf32>
    %124 = tpu.matmul %123, %14, %cst_39 {dimension_numbers = #tpu.dot_dimension_numbers<[1], [0], [0], [1], [0, 0, 1, 1], [], []>} : vector<8x128xf32>, vector<128x128xf32>, vector<8x128xf32> -> vector<8x128xf32>
    %125 = arith.addf %124, %12 : vector<8x128xf32>
    %126 = math.tanh %125 : vector<8x128xf32>
    %cst_40 = arith.constant dense<0.000000e+00> : vector<8x128xf32>
    %127 = tpu.matmul %126, %15, %cst_40 {dimension_numbers = #tpu.dot_dimension_numbers<[1], [0], [0], [1], [0, 0, 1, 1], [], []>} : vector<8x128xf32>, vector<128x128xf32>, vector<8x128xf32> -> vector<8x128xf32>
    %128 = arith.maximumf %91, %127 : vector<8x128xf32>
    %c3_i32 = arith.constant 3 : i32
    %c8_i32_41 = arith.constant 8 : i32
    %129 = arith.muli %c3_i32, %c8_i32_41 : i32
    %130 = tpu.assume_multiple %129, 8 : i32
    %131 = arith.index_cast %130 : i32 to index
    %c0_42 = arith.constant 0 : index
    %132 = vector.load %arg9[%131, %c0_42] : memref<64x384xf32, #tpu.memory_space<vmem>>, vector<8x384xf32>
    %cst_43 = arith.constant dense<0.000000e+00> : vector<8x384xf32>
    %133 = tpu.matmul %123, %13, %cst_43 {dimension_numbers = #tpu.dot_dimension_numbers<[1], [0], [0], [1], [0, 0, 1, 1], [], []>} : vector<8x128xf32>, vector<128x384xf32>, vector<8x384xf32> -> vector<8x384xf32>
    %134 = arith.addf %133, %9 : vector<8x384xf32>
    %135 = vector.extract_strided_slice %132 {offsets = [0, 0], sizes = [8, 128], strides = [1, 1]} : vector<8x384xf32> to vector<8x128xf32>
    %136 = vector.extract_strided_slice %134 {offsets = [0, 0], sizes = [8, 128], strides = [1, 1]} : vector<8x384xf32> to vector<8x128xf32>
    %137 = arith.addf %135, %136 : vector<8x128xf32>
    %138 = arith.negf %137 : vector<8x128xf32>
    %139 = math.exp %138 : vector<8x128xf32>
    %cst_44 = arith.constant 1.000000e+00 : f32
    %140 = vector.broadcast %cst_44 : f32 to vector<8x128xf32>
    %141 = arith.addf %140, %139 : vector<8x128xf32>
    %142 = arith.divf %140, %141 : vector<8x128xf32>
    %143 = vector.extract_strided_slice %132 {offsets = [0, 128], sizes = [8, 128], strides = [1, 1]} : vector<8x384xf32> to vector<8x128xf32>
    %144 = vector.extract_strided_slice %134 {offsets = [0, 128], sizes = [8, 128], strides = [1, 1]} : vector<8x384xf32> to vector<8x128xf32>
    %145 = arith.addf %143, %144 : vector<8x128xf32>
    %146 = arith.negf %145 : vector<8x128xf32>
    %147 = math.exp %146 : vector<8x128xf32>
    %cst_45 = arith.constant 1.000000e+00 : f32
    %148 = vector.broadcast %cst_45 : f32 to vector<8x128xf32>
    %149 = arith.addf %148, %147 : vector<8x128xf32>
    %150 = arith.divf %148, %149 : vector<8x128xf32>
    %151 = vector.extract_strided_slice %132 {offsets = [0, 256], sizes = [8, 128], strides = [1, 1]} : vector<8x384xf32> to vector<8x128xf32>
    %152 = vector.extract_strided_slice %134 {offsets = [0, 256], sizes = [8, 128], strides = [1, 1]} : vector<8x384xf32> to vector<8x128xf32>
    %153 = arith.mulf %142, %152 : vector<8x128xf32>
    %154 = arith.addf %151, %153 : vector<8x128xf32>
    %155 = math.tanh %154 : vector<8x128xf32>
    %cst_46 = arith.constant 1.000000e+00 : f32
    %156 = vector.broadcast %cst_46 : f32 to vector<8x128xf32>
    %157 = arith.subf %156, %150 : vector<8x128xf32>
    %158 = arith.mulf %157, %155 : vector<8x128xf32>
    %159 = arith.mulf %150, %123 : vector<8x128xf32>
    %160 = arith.addf %158, %159 : vector<8x128xf32>
    %cst_47 = arith.constant dense<0.000000e+00> : vector<8x128xf32>
    %161 = tpu.matmul %160, %14, %cst_47 {dimension_numbers = #tpu.dot_dimension_numbers<[1], [0], [0], [1], [0, 0, 1, 1], [], []>} : vector<8x128xf32>, vector<128x128xf32>, vector<8x128xf32> -> vector<8x128xf32>
    %162 = arith.addf %161, %12 : vector<8x128xf32>
    %163 = math.tanh %162 : vector<8x128xf32>
    %cst_48 = arith.constant dense<0.000000e+00> : vector<8x128xf32>
    %164 = tpu.matmul %163, %15, %cst_48 {dimension_numbers = #tpu.dot_dimension_numbers<[1], [0], [0], [1], [0, 0, 1, 1], [], []>} : vector<8x128xf32>, vector<128x128xf32>, vector<8x128xf32> -> vector<8x128xf32>
    %165 = arith.maximumf %128, %164 : vector<8x128xf32>
    %c4_i32 = arith.constant 4 : i32
    %c8_i32_49 = arith.constant 8 : i32
    %166 = arith.muli %c4_i32, %c8_i32_49 : i32
    %167 = tpu.assume_multiple %166, 8 : i32
    %168 = arith.index_cast %167 : i32 to index
    %c0_50 = arith.constant 0 : index
    %169 = vector.load %arg9[%168, %c0_50] : memref<64x384xf32, #tpu.memory_space<vmem>>, vector<8x384xf32>
    %cst_51 = arith.constant dense<0.000000e+00> : vector<8x384xf32>
    %170 = tpu.matmul %160, %13, %cst_51 {dimension_numbers = #tpu.dot_dimension_numbers<[1], [0], [0], [1], [0, 0, 1, 1], [], []>} : vector<8x128xf32>, vector<128x384xf32>, vector<8x384xf32> -> vector<8x384xf32>
    %171 = arith.addf %170, %9 : vector<8x384xf32>
    %172 = vector.extract_strided_slice %169 {offsets = [0, 0], sizes = [8, 128], strides = [1, 1]} : vector<8x384xf32> to vector<8x128xf32>
    %173 = vector.extract_strided_slice %171 {offsets = [0, 0], sizes = [8, 128], strides = [1, 1]} : vector<8x384xf32> to vector<8x128xf32>
    %174 = arith.addf %172, %173 : vector<8x128xf32>
    %175 = arith.negf %174 : vector<8x128xf32>
    %176 = math.exp %175 : vector<8x128xf32>
    %cst_52 = arith.constant 1.000000e+00 : f32
    %177 = vector.broadcast %cst_52 : f32 to vector<8x128xf32>
    %178 = arith.addf %177, %176 : vector<8x128xf32>
    %179 = arith.divf %177, %178 : vector<8x128xf32>
    %180 = vector.extract_strided_slice %169 {offsets = [0, 128], sizes = [8, 128], strides = [1, 1]} : vector<8x384xf32> to vector<8x128xf32>
    %181 = vector.extract_strided_slice %171 {offsets = [0, 128], sizes = [8, 128], strides = [1, 1]} : vector<8x384xf32> to vector<8x128xf32>
    %182 = arith.addf %180, %181 : vector<8x128xf32>
    %183 = arith.negf %182 : vector<8x128xf32>
    %184 = math.exp %183 : vector<8x128xf32>
    %cst_53 = arith.constant 1.000000e+00 : f32
    %185 = vector.broadcast %cst_53 : f32 to vector<8x128xf32>
    %186 = arith.addf %185, %184 : vector<8x128xf32>
    %187 = arith.divf %185, %186 : vector<8x128xf32>
    %188 = vector.extract_strided_slice %169 {offsets = [0, 256], sizes = [8, 128], strides = [1, 1]} : vector<8x384xf32> to vector<8x128xf32>
    %189 = vector.extract_strided_slice %171 {offsets = [0, 256], sizes = [8, 128], strides = [1, 1]} : vector<8x384xf32> to vector<8x128xf32>
    %190 = arith.mulf %179, %189 : vector<8x128xf32>
    %191 = arith.addf %188, %190 : vector<8x128xf32>
    %192 = math.tanh %191 : vector<8x128xf32>
    %cst_54 = arith.constant 1.000000e+00 : f32
    %193 = vector.broadcast %cst_54 : f32 to vector<8x128xf32>
    %194 = arith.subf %193, %187 : vector<8x128xf32>
    %195 = arith.mulf %194, %192 : vector<8x128xf32>
    %196 = arith.mulf %187, %160 : vector<8x128xf32>
    %197 = arith.addf %195, %196 : vector<8x128xf32>
    %cst_55 = arith.constant dense<0.000000e+00> : vector<8x128xf32>
    %198 = tpu.matmul %197, %14, %cst_55 {dimension_numbers = #tpu.dot_dimension_numbers<[1], [0], [0], [1], [0, 0, 1, 1], [], []>} : vector<8x128xf32>, vector<128x128xf32>, vector<8x128xf32> -> vector<8x128xf32>
    %199 = arith.addf %198, %12 : vector<8x128xf32>
    %200 = math.tanh %199 : vector<8x128xf32>
    %cst_56 = arith.constant dense<0.000000e+00> : vector<8x128xf32>
    %201 = tpu.matmul %200, %15, %cst_56 {dimension_numbers = #tpu.dot_dimension_numbers<[1], [0], [0], [1], [0, 0, 1, 1], [], []>} : vector<8x128xf32>, vector<128x128xf32>, vector<8x128xf32> -> vector<8x128xf32>
    %202 = arith.maximumf %165, %201 : vector<8x128xf32>
    %c5_i32 = arith.constant 5 : i32
    %c8_i32_57 = arith.constant 8 : i32
    %203 = arith.muli %c5_i32, %c8_i32_57 : i32
    %204 = tpu.assume_multiple %203, 8 : i32
    %205 = arith.index_cast %204 : i32 to index
    %c0_58 = arith.constant 0 : index
    %206 = vector.load %arg9[%205, %c0_58] : memref<64x384xf32, #tpu.memory_space<vmem>>, vector<8x384xf32>
    %cst_59 = arith.constant dense<0.000000e+00> : vector<8x384xf32>
    %207 = tpu.matmul %197, %13, %cst_59 {dimension_numbers = #tpu.dot_dimension_numbers<[1], [0], [0], [1], [0, 0, 1, 1], [], []>} : vector<8x128xf32>, vector<128x384xf32>, vector<8x384xf32> -> vector<8x384xf32>
    %208 = arith.addf %207, %9 : vector<8x384xf32>
    %209 = vector.extract_strided_slice %206 {offsets = [0, 0], sizes = [8, 128], strides = [1, 1]} : vector<8x384xf32> to vector<8x128xf32>
    %210 = vector.extract_strided_slice %208 {offsets = [0, 0], sizes = [8, 128], strides = [1, 1]} : vector<8x384xf32> to vector<8x128xf32>
    %211 = arith.addf %209, %210 : vector<8x128xf32>
    %212 = arith.negf %211 : vector<8x128xf32>
    %213 = math.exp %212 : vector<8x128xf32>
    %cst_60 = arith.constant 1.000000e+00 : f32
    %214 = vector.broadcast %cst_60 : f32 to vector<8x128xf32>
    %215 = arith.addf %214, %213 : vector<8x128xf32>
    %216 = arith.divf %214, %215 : vector<8x128xf32>
    %217 = vector.extract_strided_slice %206 {offsets = [0, 128], sizes = [8, 128], strides = [1, 1]} : vector<8x384xf32> to vector<8x128xf32>
    %218 = vector.extract_strided_slice %208 {offsets = [0, 128], sizes = [8, 128], strides = [1, 1]} : vector<8x384xf32> to vector<8x128xf32>
    %219 = arith.addf %217, %218 : vector<8x128xf32>
    %220 = arith.negf %219 : vector<8x128xf32>
    %221 = math.exp %220 : vector<8x128xf32>
    %cst_61 = arith.constant 1.000000e+00 : f32
    %222 = vector.broadcast %cst_61 : f32 to vector<8x128xf32>
    %223 = arith.addf %222, %221 : vector<8x128xf32>
    %224 = arith.divf %222, %223 : vector<8x128xf32>
    %225 = vector.extract_strided_slice %206 {offsets = [0, 256], sizes = [8, 128], strides = [1, 1]} : vector<8x384xf32> to vector<8x128xf32>
    %226 = vector.extract_strided_slice %208 {offsets = [0, 256], sizes = [8, 128], strides = [1, 1]} : vector<8x384xf32> to vector<8x128xf32>
    %227 = arith.mulf %216, %226 : vector<8x128xf32>
    %228 = arith.addf %225, %227 : vector<8x128xf32>
    %229 = math.tanh %228 : vector<8x128xf32>
    %cst_62 = arith.constant 1.000000e+00 : f32
    %230 = vector.broadcast %cst_62 : f32 to vector<8x128xf32>
    %231 = arith.subf %230, %224 : vector<8x128xf32>
    %232 = arith.mulf %231, %229 : vector<8x128xf32>
    %233 = arith.mulf %224, %197 : vector<8x128xf32>
    %234 = arith.addf %232, %233 : vector<8x128xf32>
    %cst_63 = arith.constant dense<0.000000e+00> : vector<8x128xf32>
    %235 = tpu.matmul %234, %14, %cst_63 {dimension_numbers = #tpu.dot_dimension_numbers<[1], [0], [0], [1], [0, 0, 1, 1], [], []>} : vector<8x128xf32>, vector<128x128xf32>, vector<8x128xf32> -> vector<8x128xf32>
    %236 = arith.addf %235, %12 : vector<8x128xf32>
    %237 = math.tanh %236 : vector<8x128xf32>
    %cst_64 = arith.constant dense<0.000000e+00> : vector<8x128xf32>
    %238 = tpu.matmul %237, %15, %cst_64 {dimension_numbers = #tpu.dot_dimension_numbers<[1], [0], [0], [1], [0, 0, 1, 1], [], []>} : vector<8x128xf32>, vector<128x128xf32>, vector<8x128xf32> -> vector<8x128xf32>
    %239 = arith.maximumf %202, %238 : vector<8x128xf32>
    %c6_i32 = arith.constant 6 : i32
    %c8_i32_65 = arith.constant 8 : i32
    %240 = arith.muli %c6_i32, %c8_i32_65 : i32
    %241 = tpu.assume_multiple %240, 8 : i32
    %242 = arith.index_cast %241 : i32 to index
    %c0_66 = arith.constant 0 : index
    %243 = vector.load %arg9[%242, %c0_66] : memref<64x384xf32, #tpu.memory_space<vmem>>, vector<8x384xf32>
    %cst_67 = arith.constant dense<0.000000e+00> : vector<8x384xf32>
    %244 = tpu.matmul %234, %13, %cst_67 {dimension_numbers = #tpu.dot_dimension_numbers<[1], [0], [0], [1], [0, 0, 1, 1], [], []>} : vector<8x128xf32>, vector<128x384xf32>, vector<8x384xf32> -> vector<8x384xf32>
    %245 = arith.addf %244, %9 : vector<8x384xf32>
    %246 = vector.extract_strided_slice %243 {offsets = [0, 0], sizes = [8, 128], strides = [1, 1]} : vector<8x384xf32> to vector<8x128xf32>
    %247 = vector.extract_strided_slice %245 {offsets = [0, 0], sizes = [8, 128], strides = [1, 1]} : vector<8x384xf32> to vector<8x128xf32>
    %248 = arith.addf %246, %247 : vector<8x128xf32>
    %249 = arith.negf %248 : vector<8x128xf32>
    %250 = math.exp %249 : vector<8x128xf32>
    %cst_68 = arith.constant 1.000000e+00 : f32
    %251 = vector.broadcast %cst_68 : f32 to vector<8x128xf32>
    %252 = arith.addf %251, %250 : vector<8x128xf32>
    %253 = arith.divf %251, %252 : vector<8x128xf32>
    %254 = vector.extract_strided_slice %243 {offsets = [0, 128], sizes = [8, 128], strides = [1, 1]} : vector<8x384xf32> to vector<8x128xf32>
    %255 = vector.extract_strided_slice %245 {offsets = [0, 128], sizes = [8, 128], strides = [1, 1]} : vector<8x384xf32> to vector<8x128xf32>
    %256 = arith.addf %254, %255 : vector<8x128xf32>
    %257 = arith.negf %256 : vector<8x128xf32>
    %258 = math.exp %257 : vector<8x128xf32>
    %cst_69 = arith.constant 1.000000e+00 : f32
    %259 = vector.broadcast %cst_69 : f32 to vector<8x128xf32>
    %260 = arith.addf %259, %258 : vector<8x128xf32>
    %261 = arith.divf %259, %260 : vector<8x128xf32>
    %262 = vector.extract_strided_slice %243 {offsets = [0, 256], sizes = [8, 128], strides = [1, 1]} : vector<8x384xf32> to vector<8x128xf32>
    %263 = vector.extract_strided_slice %245 {offsets = [0, 256], sizes = [8, 128], strides = [1, 1]} : vector<8x384xf32> to vector<8x128xf32>
    %264 = arith.mulf %253, %263 : vector<8x128xf32>
    %265 = arith.addf %262, %264 : vector<8x128xf32>
    %266 = math.tanh %265 : vector<8x128xf32>
    %cst_70 = arith.constant 1.000000e+00 : f32
    %267 = vector.broadcast %cst_70 : f32 to vector<8x128xf32>
    %268 = arith.subf %267, %261 : vector<8x128xf32>
    %269 = arith.mulf %268, %266 : vector<8x128xf32>
    %270 = arith.mulf %261, %234 : vector<8x128xf32>
    %271 = arith.addf %269, %270 : vector<8x128xf32>
    %cst_71 = arith.constant dense<0.000000e+00> : vector<8x128xf32>
    %272 = tpu.matmul %271, %14, %cst_71 {dimension_numbers = #tpu.dot_dimension_numbers<[1], [0], [0], [1], [0, 0, 1, 1], [], []>} : vector<8x128xf32>, vector<128x128xf32>, vector<8x128xf32> -> vector<8x128xf32>
    %273 = arith.addf %272, %12 : vector<8x128xf32>
    %274 = math.tanh %273 : vector<8x128xf32>
    %cst_72 = arith.constant dense<0.000000e+00> : vector<8x128xf32>
    %275 = tpu.matmul %274, %15, %cst_72 {dimension_numbers = #tpu.dot_dimension_numbers<[1], [0], [0], [1], [0, 0, 1, 1], [], []>} : vector<8x128xf32>, vector<128x128xf32>, vector<8x128xf32> -> vector<8x128xf32>
    %276 = arith.maximumf %239, %275 : vector<8x128xf32>
    %c7_i32 = arith.constant 7 : i32
    %c8_i32_73 = arith.constant 8 : i32
    %277 = arith.muli %c7_i32, %c8_i32_73 : i32
    %278 = tpu.assume_multiple %277, 8 : i32
    %279 = arith.index_cast %278 : i32 to index
    %c0_74 = arith.constant 0 : index
    %280 = vector.load %arg9[%279, %c0_74] : memref<64x384xf32, #tpu.memory_space<vmem>>, vector<8x384xf32>
    %cst_75 = arith.constant dense<0.000000e+00> : vector<8x384xf32>
    %281 = tpu.matmul %271, %13, %cst_75 {dimension_numbers = #tpu.dot_dimension_numbers<[1], [0], [0], [1], [0, 0, 1, 1], [], []>} : vector<8x128xf32>, vector<128x384xf32>, vector<8x384xf32> -> vector<8x384xf32>
    %282 = arith.addf %281, %9 : vector<8x384xf32>
    %283 = vector.extract_strided_slice %280 {offsets = [0, 0], sizes = [8, 128], strides = [1, 1]} : vector<8x384xf32> to vector<8x128xf32>
    %284 = vector.extract_strided_slice %282 {offsets = [0, 0], sizes = [8, 128], strides = [1, 1]} : vector<8x384xf32> to vector<8x128xf32>
    %285 = arith.addf %283, %284 : vector<8x128xf32>
    %286 = arith.negf %285 : vector<8x128xf32>
    %287 = math.exp %286 : vector<8x128xf32>
    %cst_76 = arith.constant 1.000000e+00 : f32
    %288 = vector.broadcast %cst_76 : f32 to vector<8x128xf32>
    %289 = arith.addf %288, %287 : vector<8x128xf32>
    %290 = arith.divf %288, %289 : vector<8x128xf32>
    %291 = vector.extract_strided_slice %280 {offsets = [0, 128], sizes = [8, 128], strides = [1, 1]} : vector<8x384xf32> to vector<8x128xf32>
    %292 = vector.extract_strided_slice %282 {offsets = [0, 128], sizes = [8, 128], strides = [1, 1]} : vector<8x384xf32> to vector<8x128xf32>
    %293 = arith.addf %291, %292 : vector<8x128xf32>
    %294 = arith.negf %293 : vector<8x128xf32>
    %295 = math.exp %294 : vector<8x128xf32>
    %cst_77 = arith.constant 1.000000e+00 : f32
    %296 = vector.broadcast %cst_77 : f32 to vector<8x128xf32>
    %297 = arith.addf %296, %295 : vector<8x128xf32>
    %298 = arith.divf %296, %297 : vector<8x128xf32>
    %299 = vector.extract_strided_slice %280 {offsets = [0, 256], sizes = [8, 128], strides = [1, 1]} : vector<8x384xf32> to vector<8x128xf32>
    %300 = vector.extract_strided_slice %282 {offsets = [0, 256], sizes = [8, 128], strides = [1, 1]} : vector<8x384xf32> to vector<8x128xf32>
    %301 = arith.mulf %290, %300 : vector<8x128xf32>
    %302 = arith.addf %299, %301 : vector<8x128xf32>
    %303 = math.tanh %302 : vector<8x128xf32>
    %cst_78 = arith.constant 1.000000e+00 : f32
    %304 = vector.broadcast %cst_78 : f32 to vector<8x128xf32>
    %305 = arith.subf %304, %298 : vector<8x128xf32>
    %306 = arith.mulf %305, %303 : vector<8x128xf32>
    %307 = arith.mulf %298, %271 : vector<8x128xf32>
    %308 = arith.addf %306, %307 : vector<8x128xf32>
    %cst_79 = arith.constant dense<0.000000e+00> : vector<8x128xf32>
    %309 = tpu.matmul %308, %14, %cst_79 {dimension_numbers = #tpu.dot_dimension_numbers<[1], [0], [0], [1], [0, 0, 1, 1], [], []>} : vector<8x128xf32>, vector<128x128xf32>, vector<8x128xf32> -> vector<8x128xf32>
    %310 = arith.addf %309, %12 : vector<8x128xf32>
    %311 = math.tanh %310 : vector<8x128xf32>
    %cst_80 = arith.constant dense<0.000000e+00> : vector<8x128xf32>
    %312 = tpu.matmul %311, %15, %cst_80 {dimension_numbers = #tpu.dot_dimension_numbers<[1], [0], [0], [1], [0, 0, 1, 1], [], []>} : vector<8x128xf32>, vector<128x128xf32>, vector<8x128xf32> -> vector<8x128xf32>
    %313 = arith.maximumf %276, %312 : vector<8x128xf32>
    %c8_i32_81 = arith.constant 8 : i32
    %c0_82 = arith.constant 0 : index
    %c0_83 = arith.constant 0 : index
    %314 = vector.load %arg7[%c0_82, %c0_83] : memref<1x128xf32, #tpu.memory_space<vmem>>, vector<1x128xf32>
    %315 = vector.broadcast %314 : vector<1x128xf32> to vector<8x128xf32>
    %316 = arith.addf %313, %315 : vector<8x128xf32>
    %317 = arith.negf %316 : vector<8x128xf32>
    %318 = math.exp %317 : vector<8x128xf32>
    %cst_84 = arith.constant 1.000000e+00 : f32
    %319 = vector.broadcast %cst_84 : f32 to vector<8x128xf32>
    %320 = arith.addf %319, %318 : vector<8x128xf32>
    %321 = arith.divf %319, %320 : vector<8x128xf32>
    %c0_85 = arith.constant 0 : index
    %c0_86 = arith.constant 0 : index
    %322 = vector.load %arg8[%c0_85, %c0_86] : memref<8x128xf32, #tpu.memory_space<vmem>>, vector<8x128xf32>
    tpu.vector_store %arg8[%c0_85, %c0_86], %321 {strides = array<i32>} : memref<8x128xf32, #tpu.memory_space<vmem>>, vector<8x128xf32>,
    return
  }
}

</mosaic_0001>

<bundles_post_ra>
// kernel: tpu_custom_call.1
= control target key start
LH: loop header
LB: loop body
LE: loop exit
PB: predicated region body
PF: predicated region fallthrough
CT: control target
= control target key end

     0   :  { %13 = vsyncpa [#allocation4], 0  ;;  %s6524_s0 = inlined_call_operand.hbm [shape: f32[64,128], index: 0, kind: input, shape index: {}]   ;;  %s6525_s1 = inlined_call_operand.hbm [shape: f32[128,384], index: 1, kind: input, shape index: {}]   ;;  %s6526_s2 = inlined_call_operand.hbm [shape: f32[128,384], index: 2, kind: input, shape index: {}]   ;;  %s6527_s3 = inlined_call_operand.vmem [shape: f32[2,384], index: 3, kind: input, shape index: {}]   ;;  %s6528_s4 = inlined_call_operand.hbm [shape: f32[128,128], index: 4, kind: input, shape index: {}]   ;;  %s6529_s5 = inlined_call_operand.vmem [shape: f32[1,128], index: 5, kind: input, shape index: {}]   ;;  %s6530_s6 = inlined_call_operand.hbm [shape: f32[128,128], index: 6, kind: input, shape index: {}]   ;;  %s6531_s7 = inlined_call_operand.vmem [shape: f32[1,128], index: 7, kind: input, shape index: {}]   ;;  %s6532_s8 = inlined_call_operand.hbm [shape: f32[8,128], index: 8, kind: output, shape index: {}]  }
   0x1   :  { %14 = vsyncpa [#allocation7], 0 }
   0x2   :  { %15 = vsyncpa [#allocation10], 0 }
   0x3   :  { %16 = vsyncpa [#allocation5], 0  ;;  %s5570_s27 = smov [#allocation6]   ;;  %s5430_s9 = scalar_lea.hbm %s6525_s1, 6144 }
   0x4   :  { %s34_s28 = sshll.u32 %s5570_s27, 4  ;;  %p5431_p0 = scmp.ne.s32.totalorder %s6525_s1, %s5430_s9  ;;  %s35_s28 = int_to_ptr.vmem [resolvable:$true] %s34_s28 }
   0x5   :  { %p5434_p1 = scmp.lt.u32.totalorder %s5430_s9, %s6525_s1 }
   0x7   :  { %p5436_p2 = pnand %p5434_p1, %p5431_p0 }
   0x9   :  { %5439 = shalt.err (!%p5436_p2)
}
   0xa   :  { %s5440_s14 = scalar_lea.vmem %s35_s28, 6144  ;;  %p5445_p4 = scmp.lt.s32.totalorder %s35_s28, %s35_s28 }
   0xb   :  { %p5441_p3 = scmp.ne.s32.totalorder %s35_s28, %s5440_s14  ;;  %p5446_p5 = scmp.lt.s32.totalorder %s5440_s14, %s5440_s14 }
   0xd   :  { %p5447_p6 = por %p5446_p5, %p5445_p4 }
   0xf   :  { %p5448_p7 = pnand %p5447_p6, %p5441_p3 }
  0x11   :  { %5451 = shalt.err (!%p5448_p7)
}
  0x12   :  { %s5571_s15 = smov 384   ;;  %s5572_s16 = smov 24  }
  0x13   :  { %40 = dma.hbm_to_vmem [thread:$0]  %s6525_s1, 6144, %s35_s28, [#allocation7], %s5571_s15, %s5571_s15, %s5572_s16  }
  0x14   :  { %s5573_s19 = smov [#allocation9]   ;;  %s5574_s21 = smov [#allocation3]  }
  0x15   :  { %s60_s20 = sshll.u32 %s5573_s19, 4  ;;  %s22_s22 = sshll.u32 %s5574_s21, 4  ;;  %s61_s20 = int_to_ptr.vmem [resolvable:$true] %s60_s20  ;;  %s23_s22 = int_to_ptr.vmem [resolvable:$true] %s22_s22 }
  0x16   :  { %s5452_s25 = scalar_lea.hbm %s6528_s4, 2048 }
  0x17   :  { %p5453_p8 = scmp.ne.s32.totalorder %s6528_s4, %s5452_s25  ;;  %p5456_p9 = scmp.lt.u32.totalorder %s5452_s25, %s6528_s4 }
  0x19   :  { %p5458_p10 = pnand %p5456_p9, %p5453_p8 }
  0x1b   :  { %5461 = shalt.err (!%p5458_p10)
}
  0x1c   :  { %s5462_s1 = scalar_lea.vmem %s61_s20, 2048  ;;  %p5467_p12 = scmp.lt.s32.totalorder %s61_s20, %s61_s20 }
  0x1d   :  { %p5463_p11 = scmp.ne.s32.totalorder %s61_s20, %s5462_s1  ;;  %p5468_p13 = scmp.lt.s32.totalorder %s5462_s1, %s5462_s1 }
  0x1f   :  { %p5469_p0 = por %p5468_p13, %p5467_p12 }
  0x21   :  { %p5470_p1 = pnand %p5469_p0, %p5463_p11 }
  0x23   :  { %5473 = shalt.err (!%p5470_p1)
}
  0x24   :  { %s5575_s28 = smov 128   ;;  %s5576_s9 = smov 8  }
  0x25   :  { %66 = dma.hbm_to_vmem [thread:$0]  %s6528_s4, 2048, %s61_s20, [#allocation10], %s5575_s28, %s5575_s28, %s5576_s9  }
  0x26   :  { %s5474_s14 = scalar_lea.hbm %s6524_s0, 1024 }
  0x27   :  { %p5475_p2 = scmp.ne.s32.totalorder %s6524_s0, %s5474_s14  ;;  %p5478_p3 = scmp.lt.u32.totalorder %s5474_s14, %s6524_s0 }
  0x29   :  { %p5480_p4 = pnand %p5478_p3, %p5475_p2 }
  0x2b   :  { %5483 = shalt.err (!%p5480_p4)
}
  0x2c   :  { %s5484_s23 = scalar_lea.vmem %s23_s22, 1024  ;;  %p5489_p6 = scmp.lt.s32.totalorder %s23_s22, %s23_s22 }
  0x2d   :  { %p5485_p5 = scmp.ne.s32.totalorder %s23_s22, %s5484_s23  ;;  %p5490_p7 = scmp.lt.s32.totalorder %s5484_s23, %s5484_s23 }
  0x2f   :  { %p5491_p8 = por %p5490_p7, %p5489_p6 }
  0x31   :  { %p5492_p9 = pnand %p5491_p8, %p5485_p5 }
  0x33   :  { %5495 = shalt.err (!%p5492_p9)
}
  0x34   :  { %28 = dma.hbm_to_vmem [thread:$0]  %s6524_s0, 1024, %s23_s22, [#allocation4], %s5575_s28, %s5575_s28, %s5576_s9  }
  0x35   :  { %s5577_s24 = smov [#allocation8]   ;;  %s5578_s26 = smov [#allocation11]  }
  0x36   :  { %s46_s25 = sshll.u32 %s5577_s24, 4  ;;  %s74_s27 = sshll.u32 %s5578_s26, 4  ;;  %s47_s25 = int_to_ptr.vmem [resolvable:$true] %s46_s25  ;;  %s75_s27 = int_to_ptr.vmem [resolvable:$true] %s74_s27 }
  0x37   :  { %s5496_s1 = scalar_lea.hbm %s6526_s2, 6144 }
  0x38   :  { %p5497_p10 = scmp.ne.s32.totalorder %s6526_s2, %s5496_s1  ;;  %p5500_p11 = scmp.lt.u32.totalorder %s5496_s1, %s6526_s2 }
  0x3a   :  { %p5502_p12 = pnand %p5500_p11, %p5497_p10 }
  0x3c   :  { %5505 = shalt.err (!%p5502_p12)
}
  0x3d   :  { %s5506_s0 = scalar_lea.vmem %s47_s25, 6144  ;;  %p5511_p0 = scmp.lt.s32.totalorder %s47_s25, %s47_s25 }
  0x3e   :  { %p5507_p13 = scmp.ne.s32.totalorder %s47_s25, %s5506_s0  ;;  %p5512_p1 = scmp.lt.s32.totalorder %s5506_s0, %s5506_s0 }
  0x40   :  { %p5513_p2 = por %p5512_p1, %p5511_p0 }
  0x42   :  { %p5514_p3 = pnand %p5513_p2, %p5507_p13 }
  0x44   :  { %5517 = shalt.err (!%p5514_p3)
}
  0x45   :  { %52 = dma.hbm_to_vmem [thread:$0]  %s6526_s2, 6144, %s47_s25, [#allocation7], %s5571_s15, %s5571_s15, %s5572_s16  }
  0x46   :  { %s5518_s19 = scalar_lea.hbm %s6530_s6, 2048 }
  0x47   :  { %p5519_p4 = scmp.ne.s32.totalorder %s6530_s6, %s5518_s19  ;;  %p5522_p5 = scmp.lt.u32.totalorder %s5518_s19, %s6530_s6 }
  0x49   :  { %p5524_p6 = pnand %p5522_p5, %p5519_p4 }
  0x4b   :  { %5527 = shalt.err (!%p5524_p6)
}
  0x4c   :  { %s5528_s24 = scalar_lea.vmem %s75_s27, 2048  ;;  %p5533_p8 = scmp.lt.s32.totalorder %s75_s27, %s75_s27 }
  0x4d   :  { %p5529_p7 = scmp.ne.s32.totalorder %s75_s27, %s5528_s24  ;;  %p5534_p9 = scmp.lt.s32.totalorder %s5528_s24, %s5528_s24 }
  0x4f   :  { %p5535_p10 = por %p5534_p9, %p5533_p8 }
  0x51   :  { %p5536_p11 = pnand %p5535_p10, %p5529_p7 }
  0x53   :  { %5539 = shalt.err (!%p5536_p11)
}
  0x54   :  { %80 = dma.hbm_to_vmem [thread:$0]  %s6530_s6, 2048, %s75_s27, [#allocation10], %s5575_s28, %s5575_s28, %s5576_s9  }
  0x55   :  { %5562 = dma.done.wait [#allocation4], 1024  }
  0x56   :  { %5563 = vsyncadd [#allocation4], 4294966272 }
  0x57   :  { %5564 = dma.done.wait [#allocation7], 12288  }
  0x58   :  { %5565 = vsyncadd [#allocation7], 4294955008 }
  0x59   :  { %5566 = dma.done.wait [#allocation10], 4096  }
  0x5a   :  { %5567 = vsyncadd [#allocation10], 4294963200  ;;  %v6535_v0 = vmov 0.0   ;;  %v108_v1 = vld [vmem:[#allocation6 + $0x8] sm:$0xff]  ;;  %v111_v2 = vld [vmem:[#allocation6 + $0x20] sm:$0xff]  ;;  %vm5581_vm0 = vmmov 0  }
  0x5b   :  { %235 = vmatprep.mubr.f32.mxu0 %v6535_v0  ;;  %v107_v3 = vld [vmem:[#allocation6] sm:$0xff]  ;;  %v4372_v4 = vpack.c.bf16 %v111_v2, %v108_v1  ;;  %v110_v5 = vld [vmem:[#allocation6 + $0x18] sm:$0xff]  ;;  %v117_v7 = vld [vmem:[#allocation6 + $0x50] sm:$0xff]  ;;  %s5582_s30 = smov [#allocation12]  }
  0x5c   :  { %v114_v6 = vld [vmem:[#allocation6 + $0x38] sm:$0xff]  ;;  %v4374_v8 = vpack.c.bf16 %v110_v5, %v107_v3  ;;  %v113_v10 = vld [vmem:[#allocation6 + $0x30] sm:$0xff]  ;;  %v116_v11 = vld [vmem:[#allocation6 + $0x48] sm:$0xff]  ;;  %s3018_s1 = sshll.u32 %s5582_s30, 4  ;;  %s3019_s1 = int_to_ptr.vmem [resolvable:$true] %s3018_s1 }
  0x5d   :  { %v4376_v9 = vpack.c.bf16 %v117_v7, %v114_v6  ;;  %v120_v12 = vld [vmem:[#allocation6 + $0x68] sm:$0xff]  ;;  %4373 = vmatprep.subr.bf16.mxu0 %v4372_v4  ;;  %v123_v13 = vld [vmem:[#allocation6 + $0x80] sm:$0xff]  ;;  %v4378_v14 = vpack.c.bf16 %v116_v11, %v113_v10  ;;  %v122_v17 = vld [vmem:[#allocation6 + $0x78] sm:$0xff]  ;;  %s5540_s10 = scalar_lea.vmem %s3019_s1, 128  ;;  %p5545_p13 = scmp.lt.s32.totalorder %s3019_s1, %s3019_s1 }
  0x5e   :  { %4375 = vmatpush1.bf16.msra.mxu0 %v4374_v8  ;;  %v4380_v15 = vpack.c.bf16 %v123_v13, %v120_v12  ;;  %v119_v16 = vld [vmem:[#allocation6 + $0x60] sm:$0xff]  ;;  %v126_v18 = vld [vmem:[#allocation6 + $0x98] sm:$0xff]  ;;  %v129_v19 = vld [vmem:[#allocation6 + $0xb0] sm:$0xff]  ;;  %p5541_p12 = scmp.ne.s32.totalorder %s3019_s1, %s5540_s10  ;;  %p5546_p0 = scmp.lt.s32.totalorder %s5540_s10, %s5540_s10 }
  0x5f   :  { %4377 = vmatprep.subr.bf16.mxu0 %v4376_v9  ;;  %v4382_v20 = vpack.c.bf16 %v122_v17, %v119_v16  ;;  %v125_v21 = vld [vmem:[#allocation6 + $0x90] sm:$0xff]  ;;  %v4384_v22 = vpack.c.bf16 %v129_v19, %v126_v18  ;;  %v128_v23 = vld [vmem:[#allocation6 + $0xa8] sm:$0xff]  ;;  %v135_v27 = vld [vmem:[#allocation6 + $0xe0] sm:$0xff] }
  0x60   :  { %v109_v24 = vld [vmem:[#allocation6 + $0x10] sm:$0xff]  ;;  %v112_v25 = vld [vmem:[#allocation6 + $0x28] sm:$0xff]  ;;  %v115_v29 = vld [vmem:[#allocation6 + $0x40] sm:$0xff]  ;;  %v4386_v31 = vpack.c.bf16 %v128_v23, %v125_v21  ;;  %p5547_p1 = por %p5546_p0, %p5545_p13 }
  0x61   :  { %v132_v26 = vld [vmem:[#allocation6 + $0xc8] sm:$0xff]  ;;  %v4404_v28 = vpack.c.bf16 %v112_v25, %v109_v24  ;;  %v118_v30 = vld [vmem:[#allocation6 + $0x58] sm:$0xff]  ;;  %v131_v32 = vld [vmem:[#allocation6 + $0xc0] sm:$0xff] }
  0x62   :  { %4379 = vmatpush1.bf16.msra.mxu0 %v4378_v14  ;;  %v4408_v33 = vpack.c.bf16 %v118_v30, %v115_v29  ;;  %v4388_v34 = vpack.c.bf16 %v135_v27, %v132_v26  ;;  %v134_v35 = vld [vmem:[#allocation6 + $0xd8] sm:$0xff]  ;;  %v5704_v36 = vld [vmem:[#allocation3] sm:$0xff]  ;;  %v121_v37 = vld [vmem:[#allocation6 + $0x70] sm:$0xff]  ;;  %p5548_p2 = pnand %p5547_p1, %p5541_p12 }
  0x63   :  { %4381 = vmatprep.subr.bf16.mxu0 %v4380_v15  ;;  %4405 = vmatprep.subr.bf16.mxu1 %v4404_v28  ;;  %v138_v38 = vld [vmem:[#allocation6 + $0xf8] sm:$0xff]  ;;  %v141_v39 = vld [vmem:[#allocation6 + $0x110] sm:$0xff]  ;;  %v124_v40 = vld [vmem:[#allocation6 + $0x88] sm:$0xff]  ;;  %v4390_v42 = vpack.c.bf16 %v134_v35, %v131_v32 }
  0x64   :  { %4407 = vmatpush3.bf16.msra.mxu1 %v4404_v28  ;;  %3520 = vmatprep.mubr.f32.mxu1 %v5704_v36  ;;  %v4412_v41 = vpack.c.bf16 %v124_v40, %v121_v37  ;;  %v127_v43 = vld [vmem:[#allocation6 + $0xa0] sm:$0xff]  ;;  %v130_v44 = vld [vmem:[#allocation6 + $0xb8] sm:$0xff]  ;;  %v4392_v45 = vpack.c.bf16 %v141_v39, %v138_v38  ;;  %v137_v46 = vld [vmem:[#allocation6 + $0xf0] sm:$0xff]  ;;  %v6533_v40 = vmov 0.0|0.0  }
  0x65   :  { %4409 = vmatprep.subr.bf16.mxu1 %v4408_v33  ;;  %v140_v47 = vld [vmem:[#allocation6 + $0x108] sm:$0xff]  ;;  %v147_v49 = vld [vmem:[#allocation6 + $0x140] sm:$0xff]  ;;  %v4416_v50 = vpack.c.bf16 %v130_v44, %v127_v43  ;;  %v133_v51 = vld [vmem:[#allocation6 + $0xd0] sm:$0xff] }
  0x66   :  { %4383 = vmatpush1.bf16.msra.mxu0 %v4382_v20  ;;  %v144_v48 = vld [vmem:[#allocation6 + $0x128] sm:$0xff]  ;;  %v4394_v53 = vpack.c.bf16 %v140_v47, %v137_v46  ;;  %v143_v55 = vld [vmem:[#allocation6 + $0x120] sm:$0xff]  ;;  %v146_v56 = vld [vmem:[#allocation6 + $0x138] sm:$0xff] }
  0x67   :  { %4385 = vmatprep.subr.bf16.mxu0 %v4384_v22  ;;  %v136_v52 = vld [vmem:[#allocation6 + $0xe8] sm:$0xff]  ;;  %v4396_v54 = vpack.c.bf16 %v147_v49, %v144_v48  ;;  %v150_v57 = vld [vmem:[#allocation6 + $0x158] sm:$0xff]  ;;  %v153_v58 = vld [vmem:[#allocation6 + $0x170] sm:$0xff]  ;;  %v4398_v62 = vpack.c.bf16 %v146_v56, %v143_v55 }
  0x68   :  { %4411 = vmatpush3.bf16.msra.mxu1 %v4408_v33  ;;  %v4420_v59 = vpack.c.bf16 %v136_v52, %v133_v51  ;;  %v139_v60 = vld [vmem:[#allocation6 + $0x100] sm:$0xff]  ;;  %v142_v61 = vld [vmem:[#allocation6 + $0x118] sm:$0xff]  ;;  %v4400_v63 = vpack.c.bf16 %v153_v58, %v150_v57  ;;  %v149_v1 = vld [vmem:[#allocation6 + $0x150] sm:$0xff] }
  0x69   :  { %4413 = vmatprep.subr.bf16.mxu1 %v4412_v41  ;;  %v152_v2 = vld [vmem:[#allocation6 + $0x168] sm:$0xff]  ;;  %v442_v4 = vld [vmem:[#allocation8 + $0x20] sm:$0xff]  ;;  %v4424_v5 = vpack.c.bf16 %v142_v61, %v139_v60  ;;  %v145_v6 = vld [vmem:[#allocation6 + $0x130] sm:$0xff] }
  0x6a   :  { %4387 = vmatpush1.bf16.msra.mxu0 %v4386_v31  ;;  %v439_v3 = vld [vmem:[#allocation8 + $0x8] sm:$0xff]  ;;  %v4402_v8 = vpack.c.bf16 %v152_v2, %v149_v1  ;;  %v438_v10 = vld [vmem:[#allocation8] sm:$0xff]  ;;  %v441_v11 = vld [vmem:[#allocation8 + $0x18] sm:$0xff] }
  0x6b   :  { %4389 = vmatprep.subr.bf16.mxu0 %v4388_v34  ;;  %v148_v7 = vld [vmem:[#allocation6 + $0x148] sm:$0xff]  ;;  %v5707_v9 = vpack.c.bf16 %v442_v4, %v439_v3  ;;  %v445_v12 = vld [vmem:[#allocation8 + $0x38] sm:$0xff]  ;;  %v448_v13 = vld [vmem:[#allocation8 + $0x50] sm:$0xff]  ;;  %v5709_v17 = vpack.c.bf16 %v441_v11, %v438_v10 }
  0x6c   :  { %4415 = vmatpush3.bf16.msra.mxu1 %v4412_v41  ;;  %v4428_v14 = vpack.c.bf16 %v148_v7, %v145_v6  ;;  %v151_v15 = vld [vmem:[#allocation6 + $0x160] sm:$0xff]  ;;  %v154_v16 = vld [vmem:[#allocation6 + $0x178] sm:$0xff]  ;;  %v5712_v18 = vpack.c.bf16 %v448_v13, %v445_v12  ;;  %v444_v19 = vld [vmem:[#allocation8 + $0x30] sm:$0xff] }
  0x6d   :  { %4417 = vmatprep.subr.bf16.mxu1 %v4416_v50  ;;  %v447_v20 = vld [vmem:[#allocation8 + $0x48] sm:$0xff]  ;;  %v454_v22 = vld [vmem:[#allocation8 + $0x80] sm:$0xff]  ;;  %v4432_v23 = vpack.c.bf16 %v154_v16, %v151_v15  ;;  %v453_v28 = vld [vmem:[#allocation8 + $0x78] sm:$0xff] }
  0x6e   :  { %4391 = vmatpush1.bf16.msra.mxu0 %v4390_v42  ;;  %v451_v21 = vld [vmem:[#allocation8 + $0x68] sm:$0xff]  ;;  %v5717_v25 = vpack.c.bf16 %v447_v20, %v444_v19  ;;  %v450_v27 = vld [vmem:[#allocation8 + $0x60] sm:$0xff]  ;;  %v457_v29 = vld [vmem:[#allocation8 + $0x98] sm:$0xff] }
  0x6f   :  { %4393 = vmatprep.subr.bf16.mxu0 %v4392_v45  ;;  %v100_v24 = vld [vmem:[#allocation3 + $0x8] sm:$0xff]  ;;  %v5720_v26 = vpack.c.bf16 %v454_v22, %v451_v21  ;;  %v460_v30 = vld [vmem:[#allocation8 + $0xb0] sm:$0xff]  ;;  %v5724_v34 = vpack.c.bf16 %v453_v28, %v450_v27  ;;  %v466_v39 = vld [vmem:[#allocation8 + $0xe0] sm:$0xff] }
  0x70   :  { %4419 = vmatpush3.bf16.msra.mxu1 %v4416_v50  ;;  %v440_v31 = vld [vmem:[#allocation8 + $0x10] sm:$0xff]  ;;  %v443_v32 = vld [vmem:[#allocation8 + $0x28] sm:$0xff]  ;;  %v5727_v35 = vpack.c.bf16 %v460_v30, %v457_v29  ;;  %v446_v42 = vld [vmem:[#allocation8 + $0x40] sm:$0xff] }
  0x71   :  { %4421 = vmatprep.subr.bf16.mxu1 %v4420_v59  ;;  %v101_v33 = vld [vmem:[#allocation3 + $0x10] sm:$0xff]  ;;  %v459_v37 = vld [vmem:[#allocation8 + $0xa8] sm:$0xff]  ;;  %v5730_v41 = vpack.c.bf16 %v443_v32, %v440_v31  ;;  %v449_v43 = vld [vmem:[#allocation8 + $0x58] sm:$0xff] }
  0x72   :  { %4395 = vmatpush1.bf16.msra.mxu0 %v4394_v53  ;;  %v463_v38 = vld [vmem:[#allocation8 + $0xc8] sm:$0xff]  ;;  %v102_v44 = vld [vmem:[#allocation3 + $0x18] sm:$0xff]  ;;  %v462_v47 = vld [vmem:[#allocation8 + $0xc0] sm:$0xff]  ;;  %v5740_v51 = vpack.c.bf16 %v449_v43, %v446_v42 }
  0x73   :  { %4397 = vmatprep.subr.bf16.mxu0 %v4396_v54  ;;  %v5737_v46 = vpack.c.bf16 %v466_v39, %v463_v38  ;;  %v465_v48 = vld [vmem:[#allocation8 + $0xd8] sm:$0xff]  ;;  %v472_v50 = vld [vmem:[#allocation8 + $0x110] sm:$0xff]  ;;  %v455_v53 = vld [vmem:[#allocation8 + $0x88] sm:$0xff] }
  0x74   :  { %4423 = vmatpush3.bf16.msra.mxu1 %v4420_v59  ;;  %v469_v49 = vld [vmem:[#allocation8 + $0xf8] sm:$0xff]  ;;  %v452_v52 = vld [vmem:[#allocation8 + $0x70] sm:$0xff]  ;;  %v103_v54 = vld [vmem:[#allocation3 + $0x20] sm:$0xff]  ;;  %v5745_v55 = vpack.c.bf16 %v465_v48, %v462_v47 }
  0x75   :  { %4425 = vmatprep.subr.bf16.mxu1 %v4424_v5  ;;  %v5748_v56 = vpack.c.bf16 %v472_v50, %v469_v49  ;;  %v468_v57 = vld [vmem:[#allocation8 + $0xf0] sm:$0xff]  ;;  %v471_v58 = vld [vmem:[#allocation8 + $0x108] sm:$0xff]  ;;  %v478_v60 = vld [vmem:[#allocation8 + $0x140] sm:$0xff]  ;;  %v5751_v61 = vpack.c.bf16 %v455_v53, %v452_v52 }
  0x76   :  { %4399 = vmatpush1.bf16.msra.mxu0 %v4398_v62  ;;  %v475_v59 = vld [vmem:[#allocation8 + $0x128] sm:$0xff]  ;;  %v458_v62 = vld [vmem:[#allocation8 + $0xa0] sm:$0xff]  ;;  %v5756_v2 = vpack.c.bf16 %v471_v58, %v468_v57  ;;  %v105_v3 = vld [vmem:[#allocation3 + $0x30] sm:$0xff] }
  0x77   :  { %4401 = vmatprep.subr.bf16.mxu0 %v4400_v63  ;;  %v461_v63 = vld [vmem:[#allocation8 + $0xb8] sm:$0xff]  ;;  %v104_v1 = vld [vmem:[#allocation3 + $0x28] sm:$0xff]  ;;  %v5759_v4 = vpack.c.bf16 %v478_v60, %v475_v59  ;;  %v464_v11 = vld [vmem:[#allocation8 + $0xd0] sm:$0xff] }
  0x78   :  { %4427 = vmatpush3.bf16.msra.mxu1 %v4424_v5  ;;  %v474_v5 = vld [vmem:[#allocation8 + $0x120] sm:$0xff]  ;;  %v477_v6 = vld [vmem:[#allocation8 + $0x138] sm:$0xff]  ;;  %v5762_v10 = vpack.c.bf16 %v461_v63, %v458_v62  ;;  %v467_v12 = vld [vmem:[#allocation8 + $0xe8] sm:$0xff] }
  0x79   :  { %4429 = vmatprep.subr.bf16.mxu1 %v4428_v14  ;;  %v481_v7 = vld [vmem:[#allocation8 + $0x158] sm:$0xff]  ;;  %v5767_v13 = vpack.c.bf16 %v477_v6, %v474_v5  ;;  %v480_v16 = vld [vmem:[#allocation8 + $0x150] sm:$0xff]  ;;  %v483_v19 = vld [vmem:[#allocation8 + $0x168] sm:$0xff]  ;;  %v5773_v20 = vpack.c.bf16 %v467_v12, %v464_v11 }
  0x7a   :  { %4403 = vmatpush1.bf16.msra.mxu0 %v4402_v8  ;;  %v484_v8 = vld [vmem:[#allocation8 + $0x170] sm:$0xff]  ;;  %v470_v21 = vld [vmem:[#allocation8 + $0x100] sm:$0xff]  ;;  %v473_v22 = vld [vmem:[#allocation8 + $0x118] sm:$0xff] }
  0x7b   :  { %4437 = vmatprep.subr.bf16.mxu0 %v5707_v9  ;;  %v5770_v15 = vpack.c.bf16 %v484_v8, %v481_v7  ;;  %v476_v27 = vld [vmem:[#allocation8 + $0x130] sm:$0xff]  ;;  %v479_v28 = vld [vmem:[#allocation8 + $0x148] sm:$0xff]  ;;  %v482_v30 = vld [vmem:[#allocation8 + $0x160] sm:$0xff] }
  0x7c   :  { %4431 = vmatpush3.bf16.msra.mxu1 %v4428_v14  ;;  %v106_v14 = vld [vmem:[#allocation3 + $0x38] sm:$0xff]  ;;  %v5791_v29 = vpack.c.bf16 %v479_v28, %v476_v27  ;;  %v488_v38 = vld [vmem:[#allocation9 + $0x10] sm:$0xff]  ;;  %v490_v43 = vld [vmem:[#allocation9 + $0x20] sm:$0xff]  ;;  %v156_v28 = vlaneseq }
  0x7d   :  { %236 = vmatmul.mubr.f32.vlgmr.msra.gmra.mrb[0].mxu0 %v5704_v36  ;;  %4433 = vmatprep.subr.bf16.mxu1 %v4432_v23  ;;  %v456_v36 = vld [vmem:[#allocation8 + $0x90] sm:$0xff]  ;;  %v485_v31 = vld [vmem:[#allocation8 + $0x178] sm:$0xff]  ;;  %v494_v52 = vld [vmem:[#allocation9 + $0x40] sm:$0xff] }
  0x7e   :  { %4439 = vmatpush1.bf16.msra.mxu0 %v5709_v17  ;;  %241 = vmatprep.mubr.f32.mxu0 %v6535_v0  ;;  %v5734_v45 = vpack.c.bf16 %v459_v37, %v456_v36  ;;  %v5798_v32 = vpack.c.bf16 %v485_v31, %v482_v30  ;;  %v487_v36 = vld [vmem:[#allocation9 + $0x8] sm:$0xff]  ;;  %v489_v39 = vld [vmem:[#allocation9 + $0x18] sm:$0xff]  ;;  %v492_v48 = vld [vmem:[#allocation9 + $0x30] sm:$0xff] }
  0x7f   :  { %4441 = vmatprep.subr.bf16.mxu0 %v5712_v18  ;;  %v5810_v42 = vpack.c.bf16 %v489_v39, %v488_v38  ;;  %v493_v49 = vld [vmem:[#allocation9 + $0x38] sm:$0xff]  ;;  %v495_v53 = vld [vmem:[#allocation9 + $0x48] sm:$0xff]  ;;  %v496_v57 = vld [vmem:[#allocation9 + $0x50] sm:$0xff] }
  0x80   :  { %4435 = vmatpush3.bf16.msra.mxu1 %v4432_v23  ;;  %v5780_v23 = vpack.c.bf16 %v483_v19, %v480_v16  ;;  %v5818_v50 = vpack.c.bf16 %v493_v49, %v492_v48  ;;  %v497_v58 = vld [vmem:[#allocation9 + $0x58] sm:$0xff]  ;;  %v498_v59 = vld [vmem:[#allocation9 + $0x60] sm:$0xff]  ;;  %v499_v62 = vld [vmem:[#allocation9 + $0x68] sm:$0xff] }
  0x81   :  { %242 = vmatmul.mubr.f32.gmra.mrb[2].mxu0 %v100_v24  ;;  %4468 = vmatprep.subr.bf16.mxu1 %v6533_v40  ;;  %v5826_v60 = vpack.c.bf16 %v497_v58, %v496_v57  ;;  %v5829_v63 = vpack.c.bf16 %v499_v62, %v498_v59  ;;  %v502_v6 = vld [vmem:[#allocation11] sm:$0xff]  ;;  %v503_v7 = vld [vmem:[#allocation11 + $0x8] sm:$0xff]  ;;  %v504_v8 = vld [vmem:[#allocation11 + $0x10] sm:$0xff] }
  0x82   :  { %4443 = vmatpush1.bf16.msra.mxu0 %v5717_v25  ;;  %247 = vmatprep.mubr.f32.mxu0 %v6535_v0  ;;  %v5838_v11 = vpack.c.bf16 %v503_v7, %v502_v6  ;;  %v505_v12 = vld [vmem:[#allocation11 + $0x18] sm:$0xff]  ;;  %v506_v16 = vld [vmem:[#allocation11 + $0x20] sm:$0xff]  ;;  %v507_v19 = vld [vmem:[#allocation11 + $0x28] sm:$0xff] }
  0x83   :  { %4445 = vmatprep.subr.bf16.mxu0 %v5720_v26  ;;  %3521 = vmatmul.mubr.f32.vlgmr.msra.gmra.mrb[0].mxu1 %v100_v24  ;;  %v5784_v24 = vpack.c.bf16 %v473_v22, %v470_v21  ;;  %v5845_v21 = vpack.c.bf16 %v507_v19, %v506_v16  ;;  %v508_v22 = vld [vmem:[#allocation11 + $0x30] sm:$0xff]  ;;  %v509_v27 = vld [vmem:[#allocation11 + $0x38] sm:$0xff]  ;;  %v510_v31 = vld [vmem:[#allocation11 + $0x40] sm:$0xff] }
  0x84   :  { %4470 = vmatpush3.bf16.msra.mxu1 %v5730_v41  ;;  %3523 = vmatprep.mubr.f32.mxu1 %v101_v33  ;;  %v5849_v30 = vpack.c.bf16 %v509_v27, %v508_v22 }
  0x85   :  { %248 = vmatmul.mubr.f32.gmra.mrb[4].mxu0 %v101_v33  ;;  %4471 = vmatprep.subr.bf16.mxu1 %v6533_v40  ;;  %v486_v33 = vld [vmem:[#allocation9] sm:$0xff] }
  0x86   :  { %4447 = vmatpush1.bf16.msra.mxu0 %v5724_v34  ;;  %253 = vmatprep.mubr.f32.mxu0 %v6535_v0  ;;  %v5806_v37 = vpack.c.bf16 %v487_v36, %v486_v33  ;;  %v511_v33 = vld [vmem:[#allocation11 + $0x48] sm:$0xff]  ;;  %v157_v36 = vshrl.u32 %v156_v28, 7 }
  0x87   :  { %4449 = vmatprep.subr.bf16.mxu0 %v5727_v35  ;;  %3524 = vmatmul.mubr.f32.gmra.mrb[2].mxu1 %v102_v44  ;;  %v5853_v38 = vpack.c.bf16 %v511_v33, %v510_v31 }
  0x88   :  { %4473 = vmatpush3.bf16.msra.mxu1 %v5740_v51  ;;  %3526 = vmatprep.mubr.f32.mxu1 %v103_v54  ;;  %v166_v39 = vsub.s32 2, %v157_v36  ;;  %v158_v7 = vsub.s32 0, %v157_v36  ;;  %v162_v22 = vsub.s32 1, %v157_v36 }
  0x89   :  { %254 = vmatmul.mubr.f32.gmra.mrb[6].mxu0 %v102_v44  ;;  %4474 = vmatprep.subr.bf16.mxu1 %v6533_v40  ;;  %v491_v44 = vld [vmem:[#allocation9 + $0x28] sm:$0xff] }
  0x8a   :  { %4451 = vmatpush1.bf16.msra.mxu0 %v5734_v45  ;;  %259 = vmatprep.mubr.f32.mxu0 %v6535_v0  ;;  %v5813_v47 = vpack.c.bf16 %v491_v44, %v490_v43  ;;  %v98_v43 = vld [vmem:[%s6527_s3] ss:$2 sm:$0x7] }
  0x8b   :  { %4453 = vmatprep.subr.bf16.mxu0 %v5737_v46  ;;  %3527 = vmatmul.mubr.f32.gmra.mrb[4].mxu1 %v104_v1  ;;  %v167_v44 = vrot.slane %v98_v43, %v166_v39  ;;  %v159_v28 = vrot.slane %v98_v43, %v158_v7  ;;  %v163_v33 = vrot.slane %v98_v43, %v162_v22 }
  0x8c   :  { %4476 = vmatpush3.bf16.msra.mxu1 %v5751_v61  ;;  %3529 = vmatprep.mubr.f32.mxu1 %v105_v3 }
  0x8d   :  { %260 = vmatmul.mubr.f32.gmra.mrb[8].mxu0 %v103_v54  ;;  %4477 = vmatprep.subr.bf16.mxu1 %v6533_v40  ;;  %v5822_v54 = vpack.c.bf16 %v495_v53, %v494_v52 }
  0x8e   :  { %4455 = vmatpush1.bf16.msra.mxu0 %v5745_v55  ;;  %265 = vmatprep.mubr.f32.mxu0 %v6535_v0 }
  0x8f   :  { %4457 = vmatprep.subr.bf16.mxu0 %v5748_v56  ;;  %3530 = vmatmul.mubr.f32.gmra.mrb[6].mxu1 %v106_v14 }
  0x90   :  { %4479 = vmatpush3.bf16.msra.mxu1 %v5762_v10  ;;  %3564 = vmatprep.mubr.msk.f32.mxu1 %vm5581_vm0, %v6535_v0 }
  0x91   :  { %266 = vmatmul.mubr.f32.gmra.mrb[10].mxu0 %v104_v1  ;;  %4480 = vmatprep.subr.bf16.mxu1 %v6533_v40  ;;  %v500_v1 = vld [vmem:[#allocation9 + $0x70] sm:$0xff] }
  0x92   :  { %4459 = vmatpush1.bf16.msra.mxu0 %v5756_v2  ;;  %271 = vmatprep.mubr.f32.mxu0 %v6535_v0 }
  0x93   :  { %4461 = vmatprep.subr.bf16.mxu0 %v5759_v4 }
  0x94   :  { %4482 = vmatpush3.bf16.msra.mxu1 %v5773_v20 }
  0x95   :  { %272 = vmatmul.mubr.f32.gmra.mrb[12].mxu0 %v105_v3  ;;  %4483 = vmatprep.subr.bf16.mxu1 %v6533_v40  ;;  %v501_v3 = vld [vmem:[#allocation9 + $0x78] sm:$0xff] }
  0x96   :  { %4463 = vmatpush1.bf16.msra.mxu0 %v5767_v13  ;;  %277 = vmatprep.mubr.f32.mxu0 %v6535_v0  ;;  %v5833_v5 = vpack.c.bf16 %v501_v3, %v500_v1 }
  0x97   :  { %4465 = vmatprep.subr.bf16.mxu0 %v5770_v15 }
  0x98   :  { %4485 = vmatpush3.bf16.msra.mxu1 %v5784_v24 }
  0x99   :  { %278 = vmatmul.mubr.f32.gmra.mrb[14].mxu0 %v106_v14  ;;  %4486 = vmatprep.subr.bf16.mxu1 %v6533_v40  ;;  %v5841_v14 = vpack.c.bf16 %v505_v12, %v504_v8  ;;  %v3036_v8 = vld [vmem:[%s6527_s3 + $0x1] ss:$2 sm:$0x7] }
  0x9a   :  { %4467 = vmatpush1.bf16.msra.mxu0 %v5780_v23  ;;  %588 = vmatprep.mubr.f32.mxu0 %v6535_v0  ;;  %v419_v31 = vrot.slane %v3036_v8, %v158_v7  ;;  %v5884_v43 = vrot.slane %v3036_v8, %v166_v39  ;;  %v6548_v39 = vmov 0.0  }
  0x9b   :  { %4492 = vmatprep.subr.bf16.mxu0 %v6533_v40 }
  0x9c   :  { %4488 = vmatpush3.bf16.msra.mxu1 %v5791_v29 }
  0x9d   :  { %589 = vmatmul.mubr.f32.vlgmr.msra.gmra.mrb[0].mxu0 %v6535_v0  ;;  %4489 = vmatprep.subr.bf16.mxu1 %v6533_v40 }
  0x9e   :  { %3599 = vmatprep.mubr.msk.f32.mxu0 %vm5581_vm0, %v6535_v0  ;;  %4494 = vmatpush3.bf16.msra.mxu0 %v5806_v37 }
  0x9f   :  { %4495 = vmatprep.subr.bf16.mxu0 %v6533_v40 }
  0xa0   :  { %4491 = vmatpush3.bf16.msra.mxu1 %v5798_v32 }
  0xa1   :  { %4516 = vmatprep.subr.bf16.mxu1 %v6533_v40 }
  0xa2   :  { %4497 = vmatpush3.bf16.msra.mxu0 %v5810_v42 }
  0xa3   :  { %3565 = vmatmul.mubr.f32.vlgmr.msra.gmra.mrb[8].mxu1 %v6535_v0  ;;  %4498 = vmatprep.subr.bf16.mxu0 %v6533_v40 }
  0xa4   :  { %3634 = vmatprep.mubr.msk.f32.mxu1 %vm5581_vm0, %v6535_v0  ;;  %4518 = vmatpush3.bf16.msra.mxu1 %v5838_v11 }
  0xa5   :  { %4519 = vmatprep.subr.bf16.mxu1 %v6533_v40 }
  0xa6   :  { %4500 = vmatpush3.bf16.msra.mxu0 %v5813_v47 }
  0xa7   :  { %4501 = vmatprep.subr.bf16.mxu0 %v6533_v40 }
  0xa8   :  { %4521 = vmatpush3.bf16.msra.mxu1 %v5841_v14 }
  0xa9   :  { %4522 = vmatprep.subr.bf16.mxu1 %v6533_v40 }
  0xaa   :  { %4503 = vmatpush3.bf16.msra.mxu0 %v5818_v50 }
  0xab   :  { %4504 = vmatprep.subr.bf16.mxu0 %v6533_v40 }
  0xac   :  { %4524 = vmatpush3.bf16.msra.mxu1 %v5845_v21 }
  0xad   :  { %4525 = vmatprep.subr.bf16.mxu1 %v6533_v40 }
  0xae   :  { %4506 = vmatpush3.bf16.msra.mxu0 %v5822_v54 }
  0xaf   :  { %4507 = vmatprep.subr.bf16.mxu0 %v6533_v40 }
  0xb0   :  { %4527 = vmatpush3.bf16.msra.mxu1 %v5849_v30 }
  0xb1   :  { %4528 = vmatprep.subr.bf16.mxu1 %v6533_v40 }
  0xb2   :  { %4509 = vmatpush3.bf16.msra.mxu0 %v5826_v60 }
  0xb3   :  { %4510 = vmatprep.subr.bf16.mxu0 %v6533_v40 }
  0xb4   :  { %4530 = vmatpush3.bf16.msra.mxu1 %v5853_v38 }
  0xb5   :  { %4531 = vmatprep.subr.bf16.mxu1 %v6533_v40 }
  0xb6   :  { %4512 = vmatpush3.bf16.msra.mxu0 %v5829_v63 }
  0xb7   :  { %4513 = vmatprep.subr.bf16.mxu0 %v6533_v40 }
  0xba   :  { %4515 = vmatpush3.bf16.msra.mxu0 %v5833_v5 }
  0xbb   :  { %4541 = vmatprep.subr.bf16.mxu0 %v5707_v9 }
 0x156   :  { %v3522_v48 = vpop.f32.mrb[0].mxu1 }
 0x157   :  { %v5861_v49 = vadd.f32 %v3522_v48, %v167_v44  ;;  %v350_v52 = vpop.f32.mrb[1].mxu1  ;;  %v423_v48 = vrot.slane %v3036_v8, %v162_v22  ;;  %v513_v8 = vld [vmem:[#allocation11 + $0x58] sm:$0xff] }
 0x15a   :  { %v3525_v53 = vpop.f32.mrb[2].mxu1 }
 0x15b   :  { %v5863_v57 = vadd.f32 %v3525_v53, %v167_v44  ;;  %v360_v58 = vpop.f32.mrb[3].mxu1  ;;  %v5878_v53 = vadd.f32 %v419_v31, %v159_v28 }
 0x15c   :  { %v5865_v59 = vadd.f32 %v360_v58, %v167_v44 }
 0x15d   :  { %6541 = vst [vmem:[#allocation17_spill] sm:$0xff] %v5863_v57  ;;  %6547 = vst [vmem:[#allocation23_spill] sm:$0xff] %v5878_v53 }
 0x15e   :  { %6542 = vst [vmem:[#allocation18_spill] sm:$0xff] %v5865_v59  ;;  %v3528_v62 = vpop.f32.mrb[4].mxu1 }
 0x15f   :  { %v5867_v1 = vadd.f32 %v3528_v62, %v167_v44  ;;  %v370_v3 = vpop.f32.mrb[5].mxu1  ;;  %v5880_v62 = vadd.f32 %v423_v48, %v163_v33  ;;  %v351_v48 = vadd.f32 %v350_v52, %v167_v44  ;;  %v512_v52 = vld [vmem:[#allocation11 + $0x50] sm:$0xff] }
 0x160   :  { %v5869_v6 = vadd.f32 %v370_v3, %v167_v44 }
 0x161   :  { %6543 = vst [vmem:[#allocation19_spill] sm:$0xff] %v5867_v1 }
 0x162   :  { %6544 = vst [vmem:[#allocation20_spill] sm:$0xff] %v5869_v6  ;;  %v3531_v12 = vpop.f32.mrb[6].mxu1 }
 0x163   :  { %v5874_v16 = vadd.f32 %v3531_v12, %v167_v44  ;;  %v380_v19 = vpop.f32.mrb[7].mxu1 }
 0x164   :  { %v5876_v27 = vadd.f32 %v380_v19, %v167_v44  ;;  %v6549_v44 = vmov 0.0|0.0  }
 0x165   :  { %6545 = vst [vmem:[#allocation21_spill] sm:$0xff] %v5874_v16 }
 0x166   :  { %6546 = vst [vmem:[#allocation22_spill] sm:$0xff] %v5876_v27 }
 0x170   :  { %v590_v58 = vpop.f32.mrb[0].mxu0 }
 0x171   :  { %v5269_v3 = vadd.f32 %v5878_v53, %v590_v58  ;;  %v592_v40 = vpop.f32.mrb[1].mxu0 }
 0x172   :  { %v5271_v12 = vadd.f32 %v5880_v62, %v592_v40 }
 0x173   :  { %v3038_v0 = vmul.f32 -1.442695, %v5269_v3 }
 0x174   :  { %v3039_v16 = vmul.f32 -1.442695, %v5271_v12 }
 0x175   :  { %5329 = vpow2.f32 %v3038_v0 }
 0x176   :  { %v661_v36 = vpop.f32.mrb[8].mxu1  ;;  %5331 = vpow2.f32 %v3039_v16 }
 0x177   :  { %v3566_v19 = vpop.f32.mrb[9].mxu1  ;;  %v662_v31 = vadd.f32 %v661_v36, %v5884_v43  ;;  %v514_v36 = vld [vmem:[#allocation11 + $0x60] sm:$0xff] }
 0x17f   :  { %v5330_v27 = vpop.eup %5329 }
 0x180   :  { %v669_v7 = vadd.f32 1.0, %v5330_v27  ;;  %v5332_v22 = vpop.eup %5331  ;;  %v5926_v27 = vpack.c.bf16 %v513_v8, %v512_v52 }
 0x181   :  { %v676_v28 = vadd.f32 1.0, %v5332_v22 }
 0x182   :  { %5333 = vrcp.f32 %v669_v7  ;;  %4533 = vmatpush3.bf16.msra.mxu1 %v5926_v27  ;;  %v515_v7 = vld [vmem:[#allocation11 + $0x68] sm:$0xff] }
 0x183   :  { %5335 = vrcp.f32 %v676_v28  ;;  %4534 = vmatprep.subr.bf16.mxu1 %v6549_v44  ;;  %v5930_v22 = vpack.c.bf16 %v515_v7, %v514_v36  ;;  %v516_v28 = vld [vmem:[#allocation11 + $0x70] sm:$0xff] }
 0x186   :  { %4536 = vmatpush3.bf16.msra.mxu1 %v5930_v22 }
 0x187   :  { %4537 = vmatprep.subr.bf16.mxu1 %v6549_v44 }
 0x18c   :  { %v5334_v33 = vpop.eup %5333 }
 0x18d   :  { %v679_v58 = vmul.f32 %v5334_v33, %v662_v31  ;;  %v5336_v0 = vpop.eup %5335  ;;  %v517_v31 = vld [vmem:[#allocation11 + $0x78] sm:$0xff] }
 0x18e   :  { %v682_v40 = vsub.f32 1.0, %v5336_v0  ;;  %v684_v16 = vmul.f32 0.0, %v5336_v0  ;;  %v5933_v33 = vpack.c.bf16 %v517_v31, %v516_v28 }
 0x18f   :  { %v680_v3 = vadd.f32 %v679_v58, %v351_v48  ;;  %v5941_v48 = vld [vmem:[%s6529_s5] ss:$0 sm:$0xff] }
 0x190   :  { %6550 = vst [vmem:[#allocation24_spill] sm:$0xff] %v5933_v33  ;;  %4539 = vmatpush3.bf16.msra.mxu1 %v5933_v33 }
 0x191   :  { %5337 = vtanh.f32 %v680_v3  ;;  %4572 = vmatprep.subr.bf16.mxu1 %v6549_v44 }
 0x19b   :  { %v5338_v12 = vpop.eup %5337 }
 0x19c   :  { %v683_v19 = vmul.f32 %v5338_v12, %v682_v40 }
 0x19e   :  { %v5887_v1 = vadd.f32 %v684_v16, %v683_v19 }
 0x1a0   :  { %3600 = vmatmul.mubr.f32.vlgmr.msra.gmra.mrb[16].mxu0 %v5887_v1 }
 0x1a1   :  { %4543 = vmatpush1.bf16.msra.mxu0 %v5709_v17  ;;  %897 = vmatprep.mubr.f32.mxu0 %v6548_v39 }
 0x1a2   :  { %4545 = vmatprep.subr.bf16.mxu0 %v5712_v18 }
 0x1a5   :  { %4547 = vmatpush1.bf16.msra.mxu0 %v5717_v25 }
 0x1a6   :  { %4549 = vmatprep.subr.bf16.mxu0 %v5720_v26 }
 0x1a9   :  { %4551 = vmatpush1.bf16.msra.mxu0 %v5724_v34 }
 0x1aa   :  { %4553 = vmatprep.subr.bf16.mxu0 %v5727_v35 }
 0x1ad   :  { %4555 = vmatpush1.bf16.msra.mxu0 %v5734_v45 }
 0x1ae   :  { %4557 = vmatprep.subr.bf16.mxu0 %v5737_v46 }
 0x1b1   :  { %4559 = vmatpush1.bf16.msra.mxu0 %v5745_v55 }
 0x1b2   :  { %4561 = vmatprep.subr.bf16.mxu0 %v5748_v56 }
 0x1b5   :  { %4563 = vmatpush1.bf16.msra.mxu0 %v5756_v2 }
 0x1b6   :  { %4565 = vmatprep.subr.bf16.mxu0 %v5759_v4 }
 0x1b9   :  { %4567 = vmatpush1.bf16.msra.mxu0 %v5767_v13 }
 0x1ba   :  { %4569 = vmatprep.subr.bf16.mxu0 %v5770_v15 }
 0x1bd   :  { %4571 = vmatpush1.bf16.msra.mxu0 %v5780_v23 }
 0x1be   :  { %4596 = vmatprep.subr.bf16.mxu0 %v6549_v44 }
 0x1c0   :  { %898 = vmatmul.mubr.f32.vlgmr.msra.gmra.mrb[2].mxu0 %v5887_v1 }
 0x1c1   :  { %4598 = vmatpush3.bf16.msra.mxu0 %v5806_v37  ;;  %3704 = vmatprep.mubr.msk.f32.mxu0 %vm5581_vm0, %v6548_v39 }
 0x1c2   :  { %4599 = vmatprep.subr.bf16.mxu0 %v6549_v44 }
 0x1c5   :  { %4601 = vmatpush3.bf16.msra.mxu0 %v5810_v42 }
 0x1c6   :  { %4602 = vmatprep.subr.bf16.mxu0 %v6549_v44 }
 0x1c9   :  { %4604 = vmatpush3.bf16.msra.mxu0 %v5813_v47 }
 0x1ca   :  { %4605 = vmatprep.subr.bf16.mxu0 %v6549_v44 }
 0x1cd   :  { %4607 = vmatpush3.bf16.msra.mxu0 %v5818_v50 }
 0x1ce   :  { %4608 = vmatprep.subr.bf16.mxu0 %v6549_v44 }
 0x1d1   :  { %4610 = vmatpush3.bf16.msra.mxu0 %v5822_v54 }
 0x1d2   :  { %4611 = vmatprep.subr.bf16.mxu0 %v6549_v44 }
 0x1d5   :  { %4613 = vmatpush3.bf16.msra.mxu0 %v5826_v60 }
 0x1d6   :  { %4614 = vmatprep.subr.bf16.mxu0 %v6549_v44 }
 0x1d9   :  { %4616 = vmatpush3.bf16.msra.mxu0 %v5829_v63 }
 0x1da   :  { %4617 = vmatprep.subr.bf16.mxu0 %v6549_v44 }
 0x1dd   :  { %4619 = vmatpush3.bf16.msra.mxu0 %v5833_v5 }
 0x1de   :  { %4645 = vmatprep.subr.bf16.mxu0 %v5707_v9 }
 0x273   :  { %v752_v58 = vpop.f32.mrb[16].mxu0 }
 0x274   :  { %v753_v3 = vadd.f32 %v5941_v48, %v752_v58  ;;  %v3601_v0 = vpop.f32.mrb[17].mxu0 }
 0x276   :  { %5339 = vtanh.f32 %v753_v3 }
 0x280   :  { %v5340_v40 = vpop.eup %5339 }
 0x281   :  { %3635 = vmatmul.mubr.f32.vlgmr.msra.gmra.mrb[10].mxu1 %v5340_v40 }
 0x282   :  { %4574 = vmatpush3.bf16.msra.mxu1 %v5730_v41  ;;  %3669 = vmatprep.mubr.msk.f32.mxu1 %vm5581_vm0, %v6548_v39 }
 0x283   :  { %4575 = vmatprep.subr.bf16.mxu1 %v6549_v44 }
 0x286   :  { %4577 = vmatpush3.bf16.msra.mxu1 %v5740_v51 }
 0x287   :  { %4578 = vmatprep.subr.bf16.mxu1 %v6549_v44 }
 0x28a   :  { %4580 = vmatpush3.bf16.msra.mxu1 %v5751_v61 }
 0x28b   :  { %4581 = vmatprep.subr.bf16.mxu1 %v6549_v44 }
 0x28e   :  { %4583 = vmatpush3.bf16.msra.mxu1 %v5762_v10 }
 0x28f   :  { %4584 = vmatprep.subr.bf16.mxu1 %v6549_v44 }
 0x292   :  { %4586 = vmatpush3.bf16.msra.mxu1 %v5773_v20 }
 0x293   :  { %v899_v12 = vpop.f32.mrb[2].mxu0  ;;  %4587 = vmatprep.subr.bf16.mxu1 %v6549_v44 }
 0x294   :  { %v901_v19 = vpop.f32.mrb[3].mxu0  ;;  %v5273_v16 = vadd.f32 %v5878_v53, %v899_v12 }
 0x295   :  { %v5275_v7 = vadd.f32 %v5880_v62, %v901_v19 }
 0x296   :  { %4589 = vmatpush3.bf16.msra.mxu1 %v5784_v24  ;;  %v3040_v36 = vmul.f32 -1.442695, %v5273_v16 }
 0x297   :  { %4590 = vmatprep.subr.bf16.mxu1 %v6549_v44  ;;  %v3041_v28 = vmul.f32 -1.442695, %v5275_v7 }
 0x298   :  { %5341 = vpow2.f32 %v3040_v36 }
 0x299   :  { %5343 = vpow2.f32 %v3041_v28 }
 0x29a   :  { %4592 = vmatpush3.bf16.msra.mxu1 %v5791_v29 }
 0x29b   :  { %4593 = vmatprep.subr.bf16.mxu1 %v6549_v44 }
 0x29e   :  { %4595 = vmatpush3.bf16.msra.mxu1 %v5798_v32 }
 0x29f   :  { %4620 = vmatprep.subr.bf16.mxu1 %v6549_v44 }
 0x2a1   :  { %3670 = vmatmul.mubr.f32.vlgmr.msra.gmra.mrb[12].mxu1 %v5887_v1 }
 0x2a2   :  { %4622 = vmatpush3.bf16.msra.mxu1 %v5838_v11  ;;  %3739 = vmatprep.mubr.msk.f32.mxu1 %vm5581_vm0, %v6548_v39  ;;  %v5342_v31 = vpop.eup %5341 }
 0x2a3   :  { %4623 = vmatprep.subr.bf16.mxu1 %v6549_v44  ;;  %v978_v58 = vadd.f32 1.0, %v5342_v31  ;;  %v5344_v3 = vpop.eup %5343 }
 0x2a4   :  { %v985_v0 = vadd.f32 1.0, %v5344_v3 }
 0x2a5   :  { %5345 = vrcp.f32 %v978_v58 }
 0x2a6   :  { %4625 = vmatpush3.bf16.msra.mxu1 %v5841_v14  ;;  %5347 = vrcp.f32 %v985_v0 }
 0x2a7   :  { %4626 = vmatprep.subr.bf16.mxu1 %v6549_v44 }
 0x2aa   :  { %4628 = vmatpush3.bf16.msra.mxu1 %v5845_v21 }
 0x2ab   :  { %4629 = vmatprep.subr.bf16.mxu1 %v6549_v44 }
 0x2ae   :  { %4631 = vmatpush3.bf16.msra.mxu1 %v5849_v30 }
 0x2af   :  { %4632 = vmatprep.subr.bf16.mxu1 %v6549_v44  ;;  %v5346_v59 = vpop.eup %5345 }
 0x2b0   :  { %v5348_v16 = vpop.eup %5347 }
 0x2b1   :  { %v991_v36 = vsub.f32 1.0, %v5348_v16  ;;  %v993_v28 = vmul.f32 %v5348_v16, %v5887_v1 }
 0x2b2   :  { %4634 = vmatpush3.bf16.msra.mxu1 %v5853_v38 }
 0x2b3   :  { %4635 = vmatprep.subr.bf16.mxu1 %v6549_v44 }
 0x2b6   :  { %4637 = vmatpush3.bf16.msra.mxu1 %v5926_v27 }
 0x2b7   :  { %4638 = vmatprep.subr.bf16.mxu1 %v6549_v44 }
 0x2ba   :  { %4640 = vmatpush3.bf16.msra.mxu1 %v5930_v22 }
 0x2bb   :  { %4641 = vmatprep.subr.bf16.mxu1 %v6549_v44 }
 0x2be   :  { %4643 = vmatpush3.bf16.msra.mxu1 %v5933_v33 }
 0x2bf   :  { %4676 = vmatprep.subr.bf16.mxu1 %v6549_v44 }
 0x354   :  { %v5982_v52 = vpop.f32.mrb[10].mxu1 }
 0x355   :  { %v3636_v8 = vpop.f32.mrb[11].mxu1 }
 0x374   :  { %v970_v40 = vpop.f32.mrb[12].mxu1 }
 0x375   :  { %v971_v6 = vadd.f32 %v970_v40, %v5884_v43  ;;  %v3671_v57 = vpop.f32.mrb[13].mxu1  ;;  %v6551_v40 = vld [vmem:[#allocation18_spill] sm:$0xff] }
 0x377   :  { %v988_v12 = vmul.f32 %v5346_v59, %v971_v6 }
 0x379   :  { %v989_v8 = vadd.f32 %v988_v12, %v5861_v49 }
 0x37b   :  { %5349 = vtanh.f32 %v989_v8 }
 0x385   :  { %v5350_v19 = vpop.eup %5349 }
 0x386   :  { %v992_v7 = vmul.f32 %v5350_v19, %v991_v36 }
 0x388   :  { %v5988_v31 = vadd.f32 %v993_v28, %v992_v7 }
 0x38a   :  { %3705 = vmatmul.mubr.f32.vlgmr.msra.gmra.mrb[18].mxu0 %v5988_v31 }
 0x38b   :  { %4647 = vmatpush1.bf16.msra.mxu0 %v5709_v17  ;;  %1207 = vmatprep.mubr.f32.mxu0 %v6548_v39 }
 0x38c   :  { %4649 = vmatprep.subr.bf16.mxu0 %v5712_v18 }
 0x38f   :  { %4651 = vmatpush1.bf16.msra.mxu0 %v5717_v25 }
 0x390   :  { %4653 = vmatprep.subr.bf16.mxu0 %v5720_v26 }
 0x393   :  { %4655 = vmatpush1.bf16.msra.mxu0 %v5724_v34 }
 0x394   :  { %4657 = vmatprep.subr.bf16.mxu0 %v5727_v35 }
 0x397   :  { %4659 = vmatpush1.bf16.msra.mxu0 %v5734_v45 }
 0x398   :  { %4661 = vmatprep.subr.bf16.mxu0 %v5737_v46 }
 0x39b   :  { %4663 = vmatpush1.bf16.msra.mxu0 %v5745_v55 }
 0x39c   :  { %4665 = vmatprep.subr.bf16.mxu0 %v5748_v56 }
 0x39f   :  { %4667 = vmatpush1.bf16.msra.mxu0 %v5756_v2 }
 0x3a0   :  { %4669 = vmatprep.subr.bf16.mxu0 %v5759_v4 }
 0x3a3   :  { %4671 = vmatpush1.bf16.msra.mxu0 %v5767_v13 }
 0x3a4   :  { %4673 = vmatprep.subr.bf16.mxu0 %v5770_v15 }
 0x3a7   :  { %4675 = vmatpush1.bf16.msra.mxu0 %v5780_v23 }
 0x3a8   :  { %4700 = vmatprep.subr.bf16.mxu0 %v6549_v44 }
 0x3aa   :  { %1208 = vmatmul.mubr.f32.vlgmr.msra.gmra.mrb[4].mxu0 %v5988_v31 }
 0x3ab   :  { %4702 = vmatpush3.bf16.msra.mxu0 %v5806_v37  ;;  %3809 = vmatprep.mubr.msk.f32.mxu0 %vm5581_vm0, %v6548_v39 }
 0x3ac   :  { %4703 = vmatprep.subr.bf16.mxu0 %v6549_v44 }
 0x3af   :  { %4705 = vmatpush3.bf16.msra.mxu0 %v5810_v42 }
 0x3b0   :  { %4706 = vmatprep.subr.bf16.mxu0 %v6549_v44 }
 0x3b3   :  { %4708 = vmatpush3.bf16.msra.mxu0 %v5813_v47 }
 0x3b4   :  { %4709 = vmatprep.subr.bf16.mxu0 %v6549_v44 }
 0x3b7   :  { %4711 = vmatpush3.bf16.msra.mxu0 %v5818_v50 }
 0x3b8   :  { %4712 = vmatprep.subr.bf16.mxu0 %v6549_v44 }
 0x3bb   :  { %4714 = vmatpush3.bf16.msra.mxu0 %v5822_v54 }
 0x3bc   :  { %4715 = vmatprep.subr.bf16.mxu0 %v6549_v44 }
 0x3bf   :  { %4717 = vmatpush3.bf16.msra.mxu0 %v5826_v60 }
 0x3c0   :  { %4718 = vmatprep.subr.bf16.mxu0 %v6549_v44 }
 0x3c3   :  { %4720 = vmatpush3.bf16.msra.mxu0 %v5829_v63 }
 0x3c4   :  { %4721 = vmatprep.subr.bf16.mxu0 %v6549_v44 }
 0x3c7   :  { %4723 = vmatpush3.bf16.msra.mxu0 %v5833_v5 }
 0x3c8   :  { %4749 = vmatprep.subr.bf16.mxu0 %v5707_v9 }
 0x45d   :  { %v1061_v49 = vpop.f32.mrb[18].mxu0 }
 0x45e   :  { %v1062_v57 = vadd.f32 %v5941_v48, %v1061_v49  ;;  %v3706_v59 = vpop.f32.mrb[19].mxu0 }
 0x460   :  { %5351 = vtanh.f32 %v1062_v57 }
 0x46a   :  { %v5352_v1 = vpop.eup %5351 }
 0x46b   :  { %3740 = vmatmul.mubr.f32.vlgmr.msra.gmra.mrb[14].mxu1 %v5352_v1 }
 0x46c   :  { %4678 = vmatpush3.bf16.msra.mxu1 %v5730_v41  ;;  %3774 = vmatprep.mubr.msk.f32.mxu1 %vm5581_vm0, %v6548_v39 }
 0x46d   :  { %4679 = vmatprep.subr.bf16.mxu1 %v6549_v44 }
 0x470   :  { %4681 = vmatpush3.bf16.msra.mxu1 %v5740_v51 }
 0x471   :  { %4682 = vmatprep.subr.bf16.mxu1 %v6549_v44 }
 0x474   :  { %4684 = vmatpush3.bf16.msra.mxu1 %v5751_v61 }
 0x475   :  { %4685 = vmatprep.subr.bf16.mxu1 %v6549_v44 }
 0x478   :  { %4687 = vmatpush3.bf16.msra.mxu1 %v5762_v10 }
 0x479   :  { %4688 = vmatprep.subr.bf16.mxu1 %v6549_v44 }
 0x47c   :  { %4690 = vmatpush3.bf16.msra.mxu1 %v5773_v20 }
 0x47d   :  { %v1209_v6 = vpop.f32.mrb[4].mxu0  ;;  %4691 = vmatprep.subr.bf16.mxu1 %v6549_v44 }
 0x47e   :  { %v1211_v58 = vpop.f32.mrb[5].mxu0  ;;  %v5277_v3 = vadd.f32 %v5878_v53, %v1209_v6 }
 0x47f   :  { %v5279_v16 = vadd.f32 %v5880_v62, %v1211_v58 }
 0x480   :  { %4693 = vmatpush3.bf16.msra.mxu1 %v5784_v24  ;;  %v3042_v8 = vmul.f32 -1.442695, %v5277_v3 }
 0x481   :  { %4694 = vmatprep.subr.bf16.mxu1 %v6549_v44  ;;  %v3043_v36 = vmul.f32 -1.442695, %v5279_v16 }
 0x482   :  { %5353 = vpow2.f32 %v3042_v8 }
 0x483   :  { %5355 = vpow2.f32 %v3043_v36 }
 0x484   :  { %4696 = vmatpush3.bf16.msra.mxu1 %v5791_v29 }
 0x485   :  { %4697 = vmatprep.subr.bf16.mxu1 %v6549_v44 }
 0x488   :  { %4699 = vmatpush3.bf16.msra.mxu1 %v5798_v32 }
 0x489   :  { %4724 = vmatprep.subr.bf16.mxu1 %v6549_v44 }
 0x48b   :  { %3775 = vmatmul.mubr.f32.vlgmr.msra.gmra.mrb[16].mxu1 %v5988_v31 }
 0x48c   :  { %4726 = vmatpush3.bf16.msra.mxu1 %v5838_v11  ;;  %3844 = vmatprep.mubr.msk.f32.mxu1 %vm5581_vm0, %v6548_v39  ;;  %v5354_v19 = vpop.eup %5353 }
 0x48d   :  { %4727 = vmatprep.subr.bf16.mxu1 %v6549_v44  ;;  %v1288_v7 = vadd.f32 1.0, %v5354_v19  ;;  %v5356_v28 = vpop.eup %5355 }
 0x48e   :  { %v1295_v49 = vadd.f32 1.0, %v5356_v28 }
 0x48f   :  { %5357 = vrcp.f32 %v1288_v7 }
 0x490   :  { %4729 = vmatpush3.bf16.msra.mxu1 %v5841_v14  ;;  %5359 = vrcp.f32 %v1295_v49 }
 0x491   :  { %4730 = vmatprep.subr.bf16.mxu1 %v6549_v44 }
 0x494   :  { %4732 = vmatpush3.bf16.msra.mxu1 %v5845_v21 }
 0x495   :  { %4733 = vmatprep.subr.bf16.mxu1 %v6549_v44 }
 0x498   :  { %4735 = vmatpush3.bf16.msra.mxu1 %v5849_v30 }
 0x499   :  { %4736 = vmatprep.subr.bf16.mxu1 %v6549_v44  ;;  %v5358_v6 = vpop.eup %5357 }
 0x49a   :  { %v5360_v3 = vpop.eup %5359 }
 0x49b   :  { %v1301_v8 = vsub.f32 1.0, %v5360_v3  ;;  %v1303_v36 = vmul.f32 %v5360_v3, %v5988_v31 }
 0x49c   :  { %4738 = vmatpush3.bf16.msra.mxu1 %v5853_v38 }
 0x49d   :  { %4739 = vmatprep.subr.bf16.mxu1 %v6549_v44 }
 0x4a0   :  { %4741 = vmatpush3.bf16.msra.mxu1 %v5926_v27 }
 0x4a1   :  { %4742 = vmatprep.subr.bf16.mxu1 %v6549_v44 }
 0x4a4   :  { %4744 = vmatpush3.bf16.msra.mxu1 %v5930_v22 }
 0x4a5   :  { %4745 = vmatprep.subr.bf16.mxu1 %v6549_v44 }
 0x4a8   :  { %4747 = vmatpush3.bf16.msra.mxu1 %v5933_v33 }
 0x4a9   :  { %4780 = vmatprep.subr.bf16.mxu1 %v6549_v44 }
 0x53e   :  { %v6066_v0 = vpop.f32.mrb[14].mxu1 }
 0x53f   :  { %v3741_v12 = vpop.f32.mrb[15].mxu1 }
 0x55e   :  { %v1280_v57 = vpop.f32.mrb[16].mxu1 }
 0x55f   :  { %v1281_v59 = vadd.f32 %v1280_v57, %v5884_v43  ;;  %v3776_v1 = vpop.f32.mrb[17].mxu1  ;;  %v6552_v57 = vld [vmem:[#allocation23_spill] sm:$0xff] }
 0x561   :  { %v1298_v53 = vmul.f32 %v5358_v6, %v1281_v59  ;;  %v6553_v6 = vmax.f32 %v5982_v52, %v6066_v0  ;;  %v6554_v0 = vld [vmem:[#allocation17_spill] sm:$0xff] }
 0x563   :  { %v1299_v12 = vadd.f32 %v1298_v53, %v6551_v40 }
 0x565   :  { %5361 = vtanh.f32 %v1299_v12 }
 0x56f   :  { %v5362_v58 = vpop.eup %5361 }
 0x570   :  { %v1302_v16 = vmul.f32 %v5362_v58, %v1301_v8 }
 0x572   :  { %v6074_v19 = vadd.f32 %v1303_v36, %v1302_v16 }
 0x574   :  { %3810 = vmatmul.mubr.f32.vlgmr.msra.gmra.mrb[20].mxu0 %v6074_v19 }
 0x575   :  { %4751 = vmatpush1.bf16.msra.mxu0 %v5709_v17  ;;  %1517 = vmatprep.mubr.f32.mxu0 %v6548_v39 }
 0x576   :  { %4753 = vmatprep.subr.bf16.mxu0 %v5712_v18 }
 0x579   :  { %4755 = vmatpush1.bf16.msra.mxu0 %v5717_v25 }
 0x57a   :  { %4757 = vmatprep.subr.bf16.mxu0 %v5720_v26 }
 0x57d   :  { %4759 = vmatpush1.bf16.msra.mxu0 %v5724_v34 }
 0x57e   :  { %4761 = vmatprep.subr.bf16.mxu0 %v5727_v35 }
 0x581   :  { %4763 = vmatpush1.bf16.msra.mxu0 %v5734_v45 }
 0x582   :  { %4765 = vmatprep.subr.bf16.mxu0 %v5737_v46 }
 0x585   :  { %4767 = vmatpush1.bf16.msra.mxu0 %v5745_v55 }
 0x586   :  { %4769 = vmatprep.subr.bf16.mxu0 %v5748_v56 }
 0x589   :  { %4771 = vmatpush1.bf16.msra.mxu0 %v5756_v2 }
 0x58a   :  { %4773 = vmatprep.subr.bf16.mxu0 %v5759_v4 }
 0x58d   :  { %4775 = vmatpush1.bf16.msra.mxu0 %v5767_v13 }
 0x58e   :  { %4777 = vmatprep.subr.bf16.mxu0 %v5770_v15 }
 0x591   :  { %4779 = vmatpush1.bf16.msra.mxu0 %v5780_v23 }
 0x592   :  { %4804 = vmatprep.subr.bf16.mxu0 %v6549_v44 }
 0x594   :  { %1518 = vmatmul.mubr.f32.vlgmr.msra.gmra.mrb[6].mxu0 %v6074_v19 }
 0x595   :  { %4806 = vmatpush3.bf16.msra.mxu0 %v5806_v37  ;;  %3914 = vmatprep.mubr.msk.f32.mxu0 %vm5581_vm0, %v6548_v39 }
 0x596   :  { %4807 = vmatprep.subr.bf16.mxu0 %v6549_v44 }
 0x599   :  { %4809 = vmatpush3.bf16.msra.mxu0 %v5810_v42 }
 0x59a   :  { %4810 = vmatprep.subr.bf16.mxu0 %v6549_v44 }
 0x59d   :  { %4812 = vmatpush3.bf16.msra.mxu0 %v5813_v47 }
 0x59e   :  { %4813 = vmatprep.subr.bf16.mxu0 %v6549_v44 }
 0x5a1   :  { %4815 = vmatpush3.bf16.msra.mxu0 %v5818_v50 }
 0x5a2   :  { %4816 = vmatprep.subr.bf16.mxu0 %v6549_v44 }
 0x5a5   :  { %4818 = vmatpush3.bf16.msra.mxu0 %v5822_v54 }
 0x5a6   :  { %4819 = vmatprep.subr.bf16.mxu0 %v6549_v44 }
 0x5a9   :  { %4821 = vmatpush3.bf16.msra.mxu0 %v5826_v60 }
 0x5aa   :  { %4822 = vmatprep.subr.bf16.mxu0 %v6549_v44 }
 0x5ad   :  { %4824 = vmatpush3.bf16.msra.mxu0 %v5829_v63 }
 0x5ae   :  { %4825 = vmatprep.subr.bf16.mxu0 %v6549_v44 }
 0x5b1   :  { %4827 = vmatpush3.bf16.msra.mxu0 %v5833_v5 }
 0x5b2   :  { %4853 = vmatprep.subr.bf16.mxu0 %v5707_v9 }
 0x647   :  { %v1371_v53 = vpop.f32.mrb[20].mxu0 }
 0x648   :  { %v1372_v31 = vadd.f32 %v5941_v48, %v1371_v53  ;;  %v3811_v40 = vpop.f32.mrb[21].mxu0 }
 0x64a   :  { %5363 = vtanh.f32 %v1372_v31 }
 0x654   :  { %v5364_v7 = vpop.eup %5363 }
 0x655   :  { %3845 = vmatmul.mubr.f32.vlgmr.msra.gmra.mrb[18].mxu1 %v5364_v7 }
 0x656   :  { %4782 = vmatpush3.bf16.msra.mxu1 %v5730_v41  ;;  %3879 = vmatprep.mubr.msk.f32.mxu1 %vm5581_vm0, %v6548_v39 }
 0x657   :  { %4783 = vmatprep.subr.bf16.mxu1 %v6549_v44 }
 0x65a   :  { %4785 = vmatpush3.bf16.msra.mxu1 %v5740_v51 }
 0x65b   :  { %4786 = vmatprep.subr.bf16.mxu1 %v6549_v44 }
 0x65e   :  { %4788 = vmatpush3.bf16.msra.mxu1 %v5751_v61 }
 0x65f   :  { %4789 = vmatprep.subr.bf16.mxu1 %v6549_v44 }
 0x662   :  { %4791 = vmatpush3.bf16.msra.mxu1 %v5762_v10 }
 0x663   :  { %4792 = vmatprep.subr.bf16.mxu1 %v6549_v44 }
 0x666   :  { %4794 = vmatpush3.bf16.msra.mxu1 %v5773_v20 }
 0x667   :  { %v1519_v28 = vpop.f32.mrb[6].mxu0  ;;  %4795 = vmatprep.subr.bf16.mxu1 %v6549_v44 }
 0x668   :  { %v1521_v49 = vpop.f32.mrb[7].mxu0  ;;  %v5281_v59 = vadd.f32 %v6552_v57, %v1519_v28 }
 0x669   :  { %v5283_v58 = vadd.f32 %v5880_v62, %v1521_v49 }
 0x66a   :  { %4797 = vmatpush3.bf16.msra.mxu1 %v5784_v24  ;;  %v3044_v8 = vmul.f32 -1.442695, %v5281_v59 }
 0x66b   :  { %4798 = vmatprep.subr.bf16.mxu1 %v6549_v44  ;;  %v3045_v16 = vmul.f32 -1.442695, %v5283_v58 }
 0x66c   :  { %5365 = vpow2.f32 %v3044_v8 }
 0x66d   :  { %5367 = vpow2.f32 %v3045_v16 }
 0x66e   :  { %4800 = vmatpush3.bf16.msra.mxu1 %v5791_v29 }
 0x66f   :  { %4801 = vmatprep.subr.bf16.mxu1 %v6549_v44 }
 0x672   :  { %4803 = vmatpush3.bf16.msra.mxu1 %v5798_v32 }
 0x673   :  { %4828 = vmatprep.subr.bf16.mxu1 %v6549_v44 }
 0x675   :  { %3880 = vmatmul.mubr.f32.vlgmr.msra.gmra.mrb[20].mxu1 %v6074_v19 }
 0x676   :  { %4830 = vmatpush3.bf16.msra.mxu1 %v5838_v11  ;;  %3949 = vmatprep.mubr.msk.f32.mxu1 %vm5581_vm0, %v6548_v39  ;;  %v5366_v36 = vpop.eup %5365 }
 0x677   :  { %4831 = vmatprep.subr.bf16.mxu1 %v6549_v44  ;;  %v1598_v53 = vadd.f32 1.0, %v5366_v36  ;;  %v5368_v31 = vpop.eup %5367 }
 0x678   :  { %v1605_v40 = vadd.f32 1.0, %v5368_v31  ;;  %v6555_v31 = vld [vmem:[#allocation24_spill] sm:$0xff] }
 0x679   :  { %5369 = vrcp.f32 %v1598_v53 }
 0x67a   :  { %4833 = vmatpush3.bf16.msra.mxu1 %v5841_v14  ;;  %5371 = vrcp.f32 %v1605_v40  ;;  %v6556_v40 = vld [vmem:[#allocation23_spill] sm:$0xff] }
 0x67b   :  { %4834 = vmatprep.subr.bf16.mxu1 %v6549_v44 }
 0x67e   :  { %4836 = vmatpush3.bf16.msra.mxu1 %v5845_v21 }
 0x67f   :  { %4837 = vmatprep.subr.bf16.mxu1 %v6549_v44 }
 0x682   :  { %4839 = vmatpush3.bf16.msra.mxu1 %v5849_v30 }
 0x683   :  { %4840 = vmatprep.subr.bf16.mxu1 %v6549_v44 }
 0x686   :  { %4842 = vmatpush3.bf16.msra.mxu1 %v5853_v38 }
 0x687   :  { %4843 = vmatprep.subr.bf16.mxu1 %v6549_v44 }
 0x68a   :  { %4845 = vmatpush3.bf16.msra.mxu1 %v5926_v27 }
 0x68b   :  { %4846 = vmatprep.subr.bf16.mxu1 %v6549_v44 }
 0x68e   :  { %4848 = vmatpush3.bf16.msra.mxu1 %v5930_v22 }
 0x68f   :  { %4849 = vmatprep.subr.bf16.mxu1 %v6549_v44 }
 0x692   :  { %4851 = vmatpush3.bf16.msra.mxu1 %v5933_v33  ;;  %v5370_v33 = vpop.eup %5369 }
 0x693   :  { %4884 = vmatprep.subr.bf16.mxu1 %v6549_v44  ;;  %v5372_v59 = vpop.eup %5371 }
 0x694   :  { %v1613_v8 = vmul.f32 %v5372_v59, %v6074_v19 }
 0x728   :  { %v1442_v1 = vpop.f32.mrb[18].mxu1 }
 0x729   :  { %v6155_v12 = vmax.f32 %v6553_v6, %v1442_v1  ;;  %v3846_v3 = vpop.f32.mrb[19].mxu1  ;;  %v1611_v6 = vsub.f32 1.0, %v5372_v59 }
 0x748   :  { %v1590_v7 = vpop.f32.mrb[20].mxu1 }
 0x749   :  { %v1591_v28 = vadd.f32 %v1590_v7, %v5884_v43  ;;  %v3881_v57 = vpop.f32.mrb[21].mxu1 }
 0x74b   :  { %v1608_v52 = vmul.f32 %v5370_v33, %v1591_v28 }
 0x74d   :  { %v1609_v1 = vadd.f32 %v1608_v52, %v6554_v0  ;;  %v6557_v52 = vld [vmem:[#allocation20_spill] sm:$0xff] }
 0x74f   :  { %5373 = vtanh.f32 %v1609_v1 }
 0x759   :  { %v5374_v49 = vpop.eup %5373 }
 0x75a   :  { %v1612_v3 = vmul.f32 %v5374_v49, %v1611_v6 }
 0x75c   :  { %v6161_v58 = vadd.f32 %v1613_v8, %v1612_v3 }
 0x75e   :  { %3915 = vmatmul.mubr.f32.vlgmr.msra.gmra.mrb[22].mxu0 %v6161_v58 }
 0x75f   :  { %4855 = vmatpush1.bf16.msra.mxu0 %v5709_v17  ;;  %1827 = vmatprep.mubr.f32.mxu0 %v6548_v39 }
 0x760   :  { %4857 = vmatprep.subr.bf16.mxu0 %v5712_v18 }
 0x763   :  { %4859 = vmatpush1.bf16.msra.mxu0 %v5717_v25 }
 0x764   :  { %4861 = vmatprep.subr.bf16.mxu0 %v5720_v26 }
 0x767   :  { %4863 = vmatpush1.bf16.msra.mxu0 %v5724_v34 }
 0x768   :  { %4865 = vmatprep.subr.bf16.mxu0 %v5727_v35 }
 0x76b   :  { %4867 = vmatpush1.bf16.msra.mxu0 %v5734_v45 }
 0x76c   :  { %4869 = vmatprep.subr.bf16.mxu0 %v5737_v46 }
 0x76f   :  { %4871 = vmatpush1.bf16.msra.mxu0 %v5745_v55 }
 0x770   :  { %4873 = vmatprep.subr.bf16.mxu0 %v5748_v56 }
 0x773   :  { %4875 = vmatpush1.bf16.msra.mxu0 %v5756_v2 }
 0x774   :  { %4877 = vmatprep.subr.bf16.mxu0 %v5759_v4 }
 0x777   :  { %4879 = vmatpush1.bf16.msra.mxu0 %v5767_v13 }
 0x778   :  { %4881 = vmatprep.subr.bf16.mxu0 %v5770_v15 }
 0x77b   :  { %4883 = vmatpush1.bf16.msra.mxu0 %v5780_v23 }
 0x77c   :  { %4908 = vmatprep.subr.bf16.mxu0 %v6549_v44 }
 0x77e   :  { %1828 = vmatmul.mubr.f32.vlgmr.msra.gmra.mrb[8].mxu0 %v6161_v58 }
 0x77f   :  { %4910 = vmatpush3.bf16.msra.mxu0 %v5806_v37  ;;  %4019 = vmatprep.mubr.msk.f32.mxu0 %vm5581_vm0, %v6548_v39 }
 0x780   :  { %4911 = vmatprep.subr.bf16.mxu0 %v6549_v44 }
 0x783   :  { %4913 = vmatpush3.bf16.msra.mxu0 %v5810_v42 }
 0x784   :  { %4914 = vmatprep.subr.bf16.mxu0 %v6549_v44 }
 0x787   :  { %4916 = vmatpush3.bf16.msra.mxu0 %v5813_v47 }
 0x788   :  { %4917 = vmatprep.subr.bf16.mxu0 %v6549_v44 }
 0x78b   :  { %4919 = vmatpush3.bf16.msra.mxu0 %v5818_v50 }
 0x78c   :  { %4920 = vmatprep.subr.bf16.mxu0 %v6549_v44 }
 0x78f   :  { %4922 = vmatpush3.bf16.msra.mxu0 %v5822_v54 }
 0x790   :  { %4923 = vmatprep.subr.bf16.mxu0 %v6549_v44 }
 0x793   :  { %4925 = vmatpush3.bf16.msra.mxu0 %v5826_v60 }
 0x794   :  { %4926 = vmatprep.subr.bf16.mxu0 %v6549_v44 }
 0x797   :  { %4928 = vmatpush3.bf16.msra.mxu0 %v5829_v63 }
 0x798   :  { %4929 = vmatprep.subr.bf16.mxu0 %v6549_v44 }
 0x79b   :  { %4931 = vmatpush3.bf16.msra.mxu0 %v5833_v5 }
 0x79c   :  { %4957 = vmatprep.subr.bf16.mxu0 %v5707_v9 }
 0x831   :  { %v1681_v33 = vpop.f32.mrb[22].mxu0 }
 0x832   :  { %v1682_v19 = vadd.f32 %v5941_v48, %v1681_v33  ;;  %v3916_v57 = vpop.f32.mrb[23].mxu0 }
 0x834   :  { %5375 = vtanh.f32 %v1682_v19 }
 0x83e   :  { %v5376_v16 = vpop.eup %5375 }
 0x83f   :  { %3950 = vmatmul.mubr.f32.vlgmr.msra.gmra.mrb[22].mxu1 %v5376_v16 }
 0x840   :  { %4886 = vmatpush3.bf16.msra.mxu1 %v5730_v41  ;;  %3984 = vmatprep.mubr.msk.f32.mxu1 %vm5581_vm0, %v6548_v39 }
 0x841   :  { %4887 = vmatprep.subr.bf16.mxu1 %v6549_v44 }
 0x844   :  { %4889 = vmatpush3.bf16.msra.mxu1 %v5740_v51 }
 0x845   :  { %4890 = vmatprep.subr.bf16.mxu1 %v6549_v44 }
 0x848   :  { %4892 = vmatpush3.bf16.msra.mxu1 %v5751_v61 }
 0x849   :  { %4893 = vmatprep.subr.bf16.mxu1 %v6549_v44 }
 0x84c   :  { %4895 = vmatpush3.bf16.msra.mxu1 %v5762_v10 }
 0x84d   :  { %4896 = vmatprep.subr.bf16.mxu1 %v6549_v44 }
 0x850   :  { %4898 = vmatpush3.bf16.msra.mxu1 %v5773_v20 }
 0x851   :  { %v1829_v36 = vpop.f32.mrb[8].mxu0  ;;  %4899 = vmatprep.subr.bf16.mxu1 %v6549_v44 }
 0x852   :  { %v1831_v53 = vpop.f32.mrb[9].mxu0  ;;  %v5285_v7 = vadd.f32 %v6556_v40, %v1829_v36 }
 0x853   :  { %v5287_v59 = vadd.f32 %v5880_v62, %v1831_v53 }
 0x854   :  { %4901 = vmatpush3.bf16.msra.mxu1 %v5784_v24  ;;  %v3046_v1 = vmul.f32 -1.442695, %v5285_v7 }
 0x855   :  { %4902 = vmatprep.subr.bf16.mxu1 %v6549_v44  ;;  %v3047_v6 = vmul.f32 -1.442695, %v5287_v59 }
 0x856   :  { %5377 = vpow2.f32 %v3046_v1 }
 0x857   :  { %5379 = vpow2.f32 %v3047_v6 }
 0x858   :  { %4904 = vmatpush3.bf16.msra.mxu1 %v5791_v29 }
 0x859   :  { %4905 = vmatprep.subr.bf16.mxu1 %v6549_v44 }
 0x85c   :  { %4907 = vmatpush3.bf16.msra.mxu1 %v5798_v32 }
 0x85d   :  { %4932 = vmatprep.subr.bf16.mxu1 %v6549_v44 }
 0x85f   :  { %3985 = vmatmul.mubr.f32.vlgmr.msra.gmra.mrb[24].mxu1 %v6161_v58 }
 0x860   :  { %4934 = vmatpush3.bf16.msra.mxu1 %v5838_v11  ;;  %4054 = vmatprep.mubr.msk.f32.mxu1 %vm5581_vm0, %v6548_v39  ;;  %v5378_v49 = vpop.eup %5377 }
 0x861   :  { %4935 = vmatprep.subr.bf16.mxu1 %v6549_v44  ;;  %v1908_v3 = vadd.f32 1.0, %v5378_v49  ;;  %v5380_v8 = vpop.eup %5379 }
 0x862   :  { %v1915_v33 = vadd.f32 1.0, %v5380_v8 }
 0x863   :  { %5381 = vrcp.f32 %v1908_v3 }
 0x864   :  { %4937 = vmatpush3.bf16.msra.mxu1 %v5841_v14  ;;  %5383 = vrcp.f32 %v1915_v33  ;;  %v6558_v33 = vld [vmem:[#allocation23_spill] sm:$0xff] }
 0x865   :  { %4938 = vmatprep.subr.bf16.mxu1 %v6549_v44 }
 0x868   :  { %4940 = vmatpush3.bf16.msra.mxu1 %v5845_v21 }
 0x869   :  { %4941 = vmatprep.subr.bf16.mxu1 %v6549_v44 }
 0x86c   :  { %4943 = vmatpush3.bf16.msra.mxu1 %v5849_v30 }
 0x86d   :  { %4944 = vmatprep.subr.bf16.mxu1 %v6549_v44  ;;  %v5382_v36 = vpop.eup %5381 }
 0x86e   :  { %v5384_v7 = vpop.eup %5383 }
 0x86f   :  { %v1921_v1 = vsub.f32 1.0, %v5384_v7  ;;  %v1923_v6 = vmul.f32 %v5384_v7, %v6161_v58 }
 0x870   :  { %4946 = vmatpush3.bf16.msra.mxu1 %v5853_v38 }
 0x871   :  { %4947 = vmatprep.subr.bf16.mxu1 %v6549_v44 }
 0x874   :  { %4949 = vmatpush3.bf16.msra.mxu1 %v5926_v27 }
 0x875   :  { %4950 = vmatprep.subr.bf16.mxu1 %v6549_v44 }
 0x878   :  { %4952 = vmatpush3.bf16.msra.mxu1 %v5930_v22 }
 0x879   :  { %4953 = vmatprep.subr.bf16.mxu1 %v6549_v44 }
 0x87c   :  { %4955 = vmatpush3.bf16.msra.mxu1 %v6555_v31 }
 0x87d   :  { %4988 = vmatprep.subr.bf16.mxu1 %v6549_v44 }
 0x912   :  { %v6239_v28 = vpop.f32.mrb[22].mxu1 }
 0x913   :  { %v3951_v0 = vpop.f32.mrb[23].mxu1 }
 0x932   :  { %v1900_v19 = vpop.f32.mrb[24].mxu1 }
 0x933   :  { %v1901_v57 = vadd.f32 %v1900_v19, %v5884_v43  ;;  %v3986_v16 = vpop.f32.mrb[25].mxu1 }
 0x934   :  { %v6559_v16 = vmax.f32 %v6155_v12, %v6239_v28  ;;  %v6560_v28 = vld [vmem:[#allocation19_spill] sm:$0xff] }
 0x935   :  { %v1918_v40 = vmul.f32 %v5382_v36, %v1901_v57 }
 0x937   :  { %v1919_v0 = vadd.f32 %v1918_v40, %v6557_v52 }
 0x939   :  { %5385 = vtanh.f32 %v1919_v0 }
 0x943   :  { %v5386_v53 = vpop.eup %5385 }
 0x944   :  { %v1922_v59 = vmul.f32 %v5386_v53, %v1921_v1 }
 0x946   :  { %v6247_v49 = vadd.f32 %v1923_v6, %v1922_v59 }
 0x948   :  { %4020 = vmatmul.mubr.f32.vlgmr.msra.gmra.mrb[24].mxu0 %v6247_v49 }
 0x949   :  { %4959 = vmatpush1.bf16.msra.mxu0 %v5709_v17  ;;  %2137 = vmatprep.mubr.f32.mxu0 %v6548_v39 }
 0x94a   :  { %4961 = vmatprep.subr.bf16.mxu0 %v5712_v18 }
 0x94d   :  { %4963 = vmatpush1.bf16.msra.mxu0 %v5717_v25 }
 0x94e   :  { %4965 = vmatprep.subr.bf16.mxu0 %v5720_v26 }
 0x951   :  { %4967 = vmatpush1.bf16.msra.mxu0 %v5724_v34 }
 0x952   :  { %4969 = vmatprep.subr.bf16.mxu0 %v5727_v35 }
 0x955   :  { %4971 = vmatpush1.bf16.msra.mxu0 %v5734_v45 }
 0x956   :  { %4973 = vmatprep.subr.bf16.mxu0 %v5737_v46 }
 0x959   :  { %4975 = vmatpush1.bf16.msra.mxu0 %v5745_v55 }
 0x95a   :  { %4977 = vmatprep.subr.bf16.mxu0 %v5748_v56 }
 0x95d   :  { %4979 = vmatpush1.bf16.msra.mxu0 %v5756_v2 }
 0x95e   :  { %4981 = vmatprep.subr.bf16.mxu0 %v5759_v4 }
 0x961   :  { %4983 = vmatpush1.bf16.msra.mxu0 %v5767_v13 }
 0x962   :  { %4985 = vmatprep.subr.bf16.mxu0 %v5770_v15 }
 0x965   :  { %4987 = vmatpush1.bf16.msra.mxu0 %v5780_v23 }
 0x966   :  { %5012 = vmatprep.subr.bf16.mxu0 %v6549_v44 }
 0x968   :  { %2138 = vmatmul.mubr.f32.vlgmr.msra.gmra.mrb[10].mxu0 %v6247_v49 }
 0x969   :  { %5014 = vmatpush3.bf16.msra.mxu0 %v5806_v37  ;;  %4124 = vmatprep.mubr.msk.f32.mxu0 %vm5581_vm0, %v6548_v39 }
 0x96a   :  { %5015 = vmatprep.subr.bf16.mxu0 %v6549_v44 }
 0x96d   :  { %5017 = vmatpush3.bf16.msra.mxu0 %v5810_v42 }
 0x96e   :  { %5018 = vmatprep.subr.bf16.mxu0 %v6549_v44 }
 0x971   :  { %5020 = vmatpush3.bf16.msra.mxu0 %v5813_v47 }
 0x972   :  { %5021 = vmatprep.subr.bf16.mxu0 %v6549_v44 }
 0x975   :  { %5023 = vmatpush3.bf16.msra.mxu0 %v5818_v50 }
 0x976   :  { %5024 = vmatprep.subr.bf16.mxu0 %v6549_v44 }
 0x979   :  { %5026 = vmatpush3.bf16.msra.mxu0 %v5822_v54 }
 0x97a   :  { %5027 = vmatprep.subr.bf16.mxu0 %v6549_v44 }
 0x97d   :  { %5029 = vmatpush3.bf16.msra.mxu0 %v5826_v60 }
 0x97e   :  { %5030 = vmatprep.subr.bf16.mxu0 %v6549_v44 }
 0x981   :  { %5032 = vmatpush3.bf16.msra.mxu0 %v5829_v63 }
 0x982   :  { %5033 = vmatprep.subr.bf16.mxu0 %v6549_v44 }
 0x985   :  { %5035 = vmatpush3.bf16.msra.mxu0 %v5833_v5 }
 0x986   :  { %5061 = vmatprep.subr.bf16.mxu0 %v5707_v9 }
 0xa1b   :  { %v1991_v58 = vpop.f32.mrb[24].mxu0 }
 0xa1c   :  { %v1992_v40 = vadd.f32 %v5941_v48, %v1991_v58  ;;  %v4021_v52 = vpop.f32.mrb[25].mxu0 }
 0xa1e   :  { %5387 = vtanh.f32 %v1992_v40 }
 0xa28   :  { %v5388_v3 = vpop.eup %5387 }
 0xa29   :  { %4055 = vmatmul.mubr.f32.vlgmr.msra.gmra.mrb[26].mxu1 %v5388_v3 }
 0xa2a   :  { %4990 = vmatpush3.bf16.msra.mxu1 %v5730_v41  ;;  %4089 = vmatprep.mubr.msk.f32.mxu1 %vm5581_vm0, %v6548_v39 }
 0xa2b   :  { %4991 = vmatprep.subr.bf16.mxu1 %v6549_v44 }
 0xa2e   :  { %4993 = vmatpush3.bf16.msra.mxu1 %v5740_v51 }
 0xa2f   :  { %4994 = vmatprep.subr.bf16.mxu1 %v6549_v44 }
 0xa32   :  { %4996 = vmatpush3.bf16.msra.mxu1 %v5751_v61 }
 0xa33   :  { %4997 = vmatprep.subr.bf16.mxu1 %v6549_v44 }
 0xa36   :  { %4999 = vmatpush3.bf16.msra.mxu1 %v5762_v10 }
 0xa37   :  { %5000 = vmatprep.subr.bf16.mxu1 %v6549_v44 }
 0xa3a   :  { %5002 = vmatpush3.bf16.msra.mxu1 %v5773_v20 }
 0xa3b   :  { %v2139_v48 = vpop.f32.mrb[10].mxu0  ;;  %5003 = vmatprep.subr.bf16.mxu1 %v6549_v44 }
 0xa3c   :  { %v2141_v8 = vpop.f32.mrb[11].mxu0  ;;  %v5289_v19 = vadd.f32 %v6558_v33, %v2139_v48 }
 0xa3d   :  { %v5291_v1 = vadd.f32 %v5880_v62, %v2141_v8 }
 0xa3e   :  { %5005 = vmatpush3.bf16.msra.mxu1 %v5784_v24  ;;  %v3048_v7 = vmul.f32 -1.442695, %v5289_v19 }
 0xa3f   :  { %5006 = vmatprep.subr.bf16.mxu1 %v6549_v44  ;;  %v3049_v53 = vmul.f32 -1.442695, %v5291_v1 }
 0xa40   :  { %5389 = vpow2.f32 %v3048_v7 }
 0xa41   :  { %5391 = vpow2.f32 %v3049_v53 }
 0xa42   :  { %5008 = vmatpush3.bf16.msra.mxu1 %v5791_v29 }
 0xa43   :  { %5009 = vmatprep.subr.bf16.mxu1 %v6549_v44 }
 0xa46   :  { %5011 = vmatpush3.bf16.msra.mxu1 %v5798_v32 }
 0xa47   :  { %5036 = vmatprep.subr.bf16.mxu1 %v6549_v44 }
 0xa49   :  { %4090 = vmatmul.mubr.f32.vlgmr.msra.gmra.mrb[28].mxu1 %v6247_v49 }
 0xa4a   :  { %5038 = vmatpush3.bf16.msra.mxu1 %v5838_v11  ;;  %4159 = vmatprep.mubr.msk.f32.mxu1 %vm5581_vm0, %v6548_v39  ;;  %v5390_v59 = vpop.eup %5389 }
 0xa4b   :  { %5039 = vmatprep.subr.bf16.mxu1 %v6549_v44  ;;  %v2218_v6 = vadd.f32 1.0, %v5390_v59  ;;  %v5392_v58 = vpop.eup %5391 }
 0xa4c   :  { %v2225_v40 = vadd.f32 1.0, %v5392_v58 }
 0xa4d   :  { %5393 = vrcp.f32 %v2218_v6 }
 0xa4e   :  { %5041 = vmatpush3.bf16.msra.mxu1 %v5841_v14  ;;  %5395 = vrcp.f32 %v2225_v40  ;;  %v6561_v40 = vld [vmem:[#allocation23_spill] sm:$0xff] }
 0xa4f   :  { %5042 = vmatprep.subr.bf16.mxu1 %v6549_v44 }
 0xa52   :  { %5044 = vmatpush3.bf16.msra.mxu1 %v5845_v21 }
 0xa53   :  { %5045 = vmatprep.subr.bf16.mxu1 %v6549_v44 }
 0xa56   :  { %5047 = vmatpush3.bf16.msra.mxu1 %v5849_v30 }
 0xa57   :  { %5048 = vmatprep.subr.bf16.mxu1 %v6549_v44  ;;  %v5394_v33 = vpop.eup %5393 }
 0xa58   :  { %v5396_v19 = vpop.eup %5395 }
 0xa59   :  { %v2233_v7 = vmul.f32 %v5396_v19, %v6247_v49 }
 0xa5a   :  { %5050 = vmatpush3.bf16.msra.mxu1 %v5853_v38 }
 0xa5b   :  { %5051 = vmatprep.subr.bf16.mxu1 %v6549_v44 }
 0xa5e   :  { %5053 = vmatpush3.bf16.msra.mxu1 %v5926_v27 }
 0xa5f   :  { %5054 = vmatprep.subr.bf16.mxu1 %v6549_v44 }
 0xa62   :  { %5056 = vmatpush3.bf16.msra.mxu1 %v5930_v22 }
 0xa63   :  { %5057 = vmatprep.subr.bf16.mxu1 %v6549_v44 }
 0xa66   :  { %5059 = vmatpush3.bf16.msra.mxu1 %v6555_v31 }
 0xa67   :  { %5092 = vmatprep.subr.bf16.mxu1 %v6549_v44 }
 0xafc   :  { %v2062_v57 = vpop.f32.mrb[26].mxu1 }
 0xafd   :  { %v6328_v36 = vmax.f32 %v6559_v16, %v2062_v57  ;;  %v4056_v0 = vpop.f32.mrb[27].mxu1  ;;  %v2231_v16 = vsub.f32 1.0, %v5396_v19 }
 0xb1c   :  { %v2210_v52 = vpop.f32.mrb[28].mxu1 }
 0xb1d   :  { %v2211_v3 = vadd.f32 %v2210_v52, %v5884_v43  ;;  %v4091_v48 = vpop.f32.mrb[29].mxu1 }
 0xb1e   :  { %v6562_v48 = vld [vmem:[#allocation22_spill] sm:$0xff] }
 0xb1f   :  { %v2228_v12 = vmul.f32 %v5394_v33, %v2211_v3  ;;  %v6376_v33 = vld [vmem:[%s6529_s5] ss:$0 sm:$0xff] }
 0xb21   :  { %v2229_v57 = vadd.f32 %v2228_v12, %v6560_v28 }
 0xb23   :  { %5397 = vtanh.f32 %v2229_v57 }
 0xb2d   :  { %v5398_v8 = vpop.eup %5397 }
 0xb2e   :  { %v2232_v0 = vmul.f32 %v5398_v8, %v2231_v16 }
 0xb30   :  { %v6334_v1 = vadd.f32 %v2233_v7, %v2232_v0 }
 0xb32   :  { %4125 = vmatmul.mubr.f32.vlgmr.msra.gmra.mrb[26].mxu0 %v6334_v1 }
 0xb33   :  { %5063 = vmatpush1.bf16.msra.mxu0 %v5709_v17  ;;  %2447 = vmatprep.mubr.f32.mxu0 %v6548_v39 }
 0xb34   :  { %5065 = vmatprep.subr.bf16.mxu0 %v5712_v18 }
 0xb37   :  { %5067 = vmatpush1.bf16.msra.mxu0 %v5717_v25 }
 0xb38   :  { %5069 = vmatprep.subr.bf16.mxu0 %v5720_v26 }
 0xb3b   :  { %5071 = vmatpush1.bf16.msra.mxu0 %v5724_v34 }
 0xb3c   :  { %5073 = vmatprep.subr.bf16.mxu0 %v5727_v35 }
 0xb3f   :  { %5075 = vmatpush1.bf16.msra.mxu0 %v5734_v45 }
 0xb40   :  { %5077 = vmatprep.subr.bf16.mxu0 %v5737_v46 }
 0xb43   :  { %5079 = vmatpush1.bf16.msra.mxu0 %v5745_v55 }
 0xb44   :  { %5081 = vmatprep.subr.bf16.mxu0 %v5748_v56 }
 0xb47   :  { %5083 = vmatpush1.bf16.msra.mxu0 %v5756_v2 }
 0xb48   :  { %5085 = vmatprep.subr.bf16.mxu0 %v5759_v4 }
 0xb4b   :  { %5087 = vmatpush1.bf16.msra.mxu0 %v5767_v13 }
 0xb4c   :  { %5089 = vmatprep.subr.bf16.mxu0 %v5770_v15 }
 0xb4f   :  { %5091 = vmatpush1.bf16.msra.mxu0 %v5780_v23 }
 0xb50   :  { %5116 = vmatprep.subr.bf16.mxu0 %v6549_v44 }
 0xb52   :  { %2448 = vmatmul.mubr.f32.vlgmr.msra.gmra.mrb[12].mxu0 %v6334_v1 }
 0xb53   :  { %5118 = vmatpush3.bf16.msra.mxu0 %v5806_v37  ;;  %4229 = vmatprep.mubr.msk.f32.mxu0 %vm5581_vm0, %v6548_v39 }
 0xb54   :  { %5119 = vmatprep.subr.bf16.mxu0 %v6549_v44 }
 0xb57   :  { %5121 = vmatpush3.bf16.msra.mxu0 %v5810_v42 }
 0xb58   :  { %5122 = vmatprep.subr.bf16.mxu0 %v6549_v44 }
 0xb5b   :  { %5124 = vmatpush3.bf16.msra.mxu0 %v5813_v47 }
 0xb5c   :  { %5125 = vmatprep.subr.bf16.mxu0 %v6549_v44 }
 0xb5f   :  { %5127 = vmatpush3.bf16.msra.mxu0 %v5818_v50 }
 0xb60   :  { %5128 = vmatprep.subr.bf16.mxu0 %v6549_v44 }
 0xb63   :  { %5130 = vmatpush3.bf16.msra.mxu0 %v5822_v54 }
 0xb64   :  { %5131 = vmatprep.subr.bf16.mxu0 %v6549_v44 }
 0xb67   :  { %5133 = vmatpush3.bf16.msra.mxu0 %v5826_v60 }
 0xb68   :  { %5134 = vmatprep.subr.bf16.mxu0 %v6549_v44 }
 0xb6b   :  { %5136 = vmatpush3.bf16.msra.mxu0 %v5829_v63 }
 0xb6c   :  { %5137 = vmatprep.subr.bf16.mxu0 %v6549_v44 }
 0xb6f   :  { %5139 = vmatpush3.bf16.msra.mxu0 %v5833_v5 }
 0xb70   :  { %5165 = vmatprep.subr.bf16.mxu0 %v5707_v9 }
 0xc05   :  { %v2301_v49 = vpop.f32.mrb[26].mxu0 }
 0xc06   :  { %v2302_v53 = vadd.f32 %v6376_v33, %v2301_v49  ;;  %v4126_v59 = vpop.f32.mrb[27].mxu0 }
 0xc08   :  { %5399 = vtanh.f32 %v2302_v53 }
 0xc12   :  { %v5400_v6 = vpop.eup %5399 }
 0xc13   :  { %4160 = vmatmul.mubr.f32.vlgmr.msra.gmra.mrb[30].mxu1 %v5400_v6 }
 0xc14   :  { %5094 = vmatpush3.bf16.msra.mxu1 %v5730_v41  ;;  %4194 = vmatprep.mubr.msk.f32.mxu1 %vm5581_vm0, %v6548_v39 }
 0xc15   :  { %5095 = vmatprep.subr.bf16.mxu1 %v6549_v44 }
 0xc18   :  { %5097 = vmatpush3.bf16.msra.mxu1 %v5740_v51 }
 0xc19   :  { %5098 = vmatprep.subr.bf16.mxu1 %v6549_v44 }
 0xc1c   :  { %5100 = vmatpush3.bf16.msra.mxu1 %v5751_v61 }
 0xc1d   :  { %5101 = vmatprep.subr.bf16.mxu1 %v6549_v44 }
 0xc20   :  { %5103 = vmatpush3.bf16.msra.mxu1 %v5762_v10 }
 0xc21   :  { %5104 = vmatprep.subr.bf16.mxu1 %v6549_v44 }
 0xc24   :  { %5106 = vmatpush3.bf16.msra.mxu1 %v5773_v20 }
 0xc25   :  { %v2449_v9 = vpop.f32.mrb[12].mxu0  ;;  %5107 = vmatprep.subr.bf16.mxu1 %v6549_v44 }
 0xc26   :  { %v2451_v58 = vpop.f32.mrb[13].mxu0  ;;  %v5293_v52 = vadd.f32 %v6561_v40, %v2449_v9 }
 0xc27   :  { %v5295_v57 = vadd.f32 %v5880_v62, %v2451_v58 }
 0xc28   :  { %5109 = vmatpush3.bf16.msra.mxu1 %v5784_v24  ;;  %v3050_v28 = vmul.f32 -1.442695, %v5293_v52 }
 0xc29   :  { %5110 = vmatprep.subr.bf16.mxu1 %v6549_v44  ;;  %v3051_v19 = vmul.f32 -1.442695, %v5295_v57 }
 0xc2a   :  { %5401 = vpow2.f32 %v3050_v28 }
 0xc2b   :  { %5403 = vpow2.f32 %v3051_v19 }
 0xc2c   :  { %5112 = vmatpush3.bf16.msra.mxu1 %v5791_v29 }
 0xc2d   :  { %5113 = vmatprep.subr.bf16.mxu1 %v6549_v44 }
 0xc30   :  { %5115 = vmatpush3.bf16.msra.mxu1 %v5798_v32 }
 0xc31   :  { %5140 = vmatprep.subr.bf16.mxu1 %v6549_v44 }
 0xc33   :  { %4195 = vmatmul.mubr.f32.vlgmr.msra.gmra.mrb[32].mxu1 %v6334_v1 }
 0xc34   :  { %5142 = vmatpush3.bf16.msra.mxu1 %v5838_v11  ;;  %4264 = vmatprep.mubr.msk.f32.mxu1 %vm5581_vm0, %v6548_v39  ;;  %v5402_v16 = vpop.eup %5401 }
 0xc35   :  { %5143 = vmatprep.subr.bf16.mxu1 %v6549_v44  ;;  %v2528_v8 = vadd.f32 1.0, %v5402_v16  ;;  %v5404_v0 = vpop.eup %5403 }
 0xc36   :  { %v2535_v7 = vadd.f32 1.0, %v5404_v0 }
 0xc37   :  { %5405 = vrcp.f32 %v2528_v8 }
 0xc38   :  { %5145 = vmatpush3.bf16.msra.mxu1 %v5841_v14  ;;  %5407 = vrcp.f32 %v2535_v7 }
 0xc39   :  { %5146 = vmatprep.subr.bf16.mxu1 %v6549_v44 }
 0xc3c   :  { %5148 = vmatpush3.bf16.msra.mxu1 %v5845_v21 }
 0xc3d   :  { %5149 = vmatprep.subr.bf16.mxu1 %v6549_v44 }
 0xc40   :  { %5151 = vmatpush3.bf16.msra.mxu1 %v5849_v30 }
 0xc41   :  { %5152 = vmatprep.subr.bf16.mxu1 %v6549_v44  ;;  %v5406_v6 = vpop.eup %5405 }
 0xc42   :  { %v5408_v52 = vpop.eup %5407 }
 0xc43   :  { %v2541_v28 = vsub.f32 1.0, %v5408_v52  ;;  %v2543_v19 = vmul.f32 %v5408_v52, %v6334_v1 }
 0xc44   :  { %5154 = vmatpush3.bf16.msra.mxu1 %v5853_v38 }
 0xc45   :  { %5155 = vmatprep.subr.bf16.mxu1 %v6549_v44 }
 0xc48   :  { %5157 = vmatpush3.bf16.msra.mxu1 %v5926_v27 }
 0xc49   :  { %5158 = vmatprep.subr.bf16.mxu1 %v6549_v44 }
 0xc4c   :  { %5160 = vmatpush3.bf16.msra.mxu1 %v5930_v22 }
 0xc4d   :  { %5161 = vmatprep.subr.bf16.mxu1 %v6549_v44 }
 0xc50   :  { %5163 = vmatpush3.bf16.msra.mxu1 %v6555_v31 }
 0xc51   :  { %5196 = vmatprep.subr.bf16.mxu1 %v6549_v44 }
 0xce6   :  { %v6417_v3 = vpop.f32.mrb[30].mxu1 }
 0xce7   :  { %v4161_v12 = vpop.f32.mrb[31].mxu1 }
 0xd06   :  { %v2520_v49 = vpop.f32.mrb[32].mxu1 }
 0xd07   :  { %v2521_v53 = vadd.f32 %v2520_v49, %v5884_v43  ;;  %v4196_v59 = vpop.f32.mrb[33].mxu1 }
 0xd09   :  { %v2538_v9 = vmul.f32 %v5406_v6, %v2521_v53 }
 0xd0b   :  { %v2539_v12 = vadd.f32 %v2538_v9, %v6562_v48 }
 0xd0d   :  { %5409 = vtanh.f32 %v2539_v12 }
 0xd17   :  { %v5410_v58 = vpop.eup %5409 }
 0xd18   :  { %v2542_v57 = vmul.f32 %v5410_v58, %v2541_v28 }
 0xd1a   :  { %v6425_v16 = vadd.f32 %v2543_v19, %v2542_v57 }
 0xd1c   :  { %4230 = vmatmul.mubr.f32.vlgmr.msra.gmra.mrb[28].mxu0 %v6425_v16 }
 0xd1d   :  { %5167 = vmatpush1.bf16.msra.mxu0 %v5709_v17  ;;  %2757 = vmatprep.mubr.f32.mxu0 %v6548_v39 }
 0xd1e   :  { %5169 = vmatprep.subr.bf16.mxu0 %v5712_v18 }
 0xd21   :  { %5171 = vmatpush1.bf16.msra.mxu0 %v5717_v25 }
 0xd22   :  { %5173 = vmatprep.subr.bf16.mxu0 %v5720_v26 }
 0xd25   :  { %5175 = vmatpush1.bf16.msra.mxu0 %v5724_v34 }
 0xd26   :  { %5177 = vmatprep.subr.bf16.mxu0 %v5727_v35 }
 0xd29   :  { %5179 = vmatpush1.bf16.msra.mxu0 %v5734_v45 }
 0xd2a   :  { %5181 = vmatprep.subr.bf16.mxu0 %v5737_v46  ;;  %v6563_v46 = vmax.f32 %v6328_v36, %v6417_v3 }
 0xd2d   :  { %5183 = vmatpush1.bf16.msra.mxu0 %v5745_v55 }
 0xd2e   :  { %5185 = vmatprep.subr.bf16.mxu0 %v5748_v56 }
 0xd31   :  { %5187 = vmatpush1.bf16.msra.mxu0 %v5756_v2 }
 0xd32   :  { %5189 = vmatprep.subr.bf16.mxu0 %v5759_v4 }
 0xd35   :  { %5191 = vmatpush1.bf16.msra.mxu0 %v5767_v13 }
 0xd36   :  { %5193 = vmatprep.subr.bf16.mxu0 %v5770_v15 }
 0xd39   :  { %5195 = vmatpush1.bf16.msra.mxu0 %v5780_v23 }
 0xd3a   :  { %5220 = vmatprep.subr.bf16.mxu0 %v6549_v44 }
 0xd3c   :  { %2758 = vmatmul.mubr.f32.vlgmr.msra.gmra.mrb[14].mxu0 %v6425_v16 }
 0xd3d   :  { %5222 = vmatpush3.bf16.msra.mxu0 %v5806_v37  ;;  %4334 = vmatprep.mubr.msk.f32.mxu0 %vm5581_vm0, %v6548_v39  ;;  %v6564_v37 = vld [vmem:[#allocation21_spill] sm:$0xff] }
 0xd3e   :  { %5223 = vmatprep.subr.bf16.mxu0 %v6549_v44 }
 0xd41   :  { %5225 = vmatpush3.bf16.msra.mxu0 %v5810_v42 }
 0xd42   :  { %5226 = vmatprep.subr.bf16.mxu0 %v6549_v44 }
 0xd45   :  { %5228 = vmatpush3.bf16.msra.mxu0 %v5813_v47 }
 0xd46   :  { %5229 = vmatprep.subr.bf16.mxu0 %v6549_v44 }
 0xd49   :  { %5231 = vmatpush3.bf16.msra.mxu0 %v5818_v50 }
 0xd4a   :  { %5232 = vmatprep.subr.bf16.mxu0 %v6549_v44 }
 0xd4d   :  { %5234 = vmatpush3.bf16.msra.mxu0 %v5822_v54 }
 0xd4e   :  { %5235 = vmatprep.subr.bf16.mxu0 %v6549_v44 }
 0xd51   :  { %5237 = vmatpush3.bf16.msra.mxu0 %v5826_v60 }
 0xd52   :  { %5238 = vmatprep.subr.bf16.mxu0 %v6549_v44 }
 0xd55   :  { %5240 = vmatpush3.bf16.msra.mxu0 %v5829_v63 }
 0xd56   :  { %5241 = vmatprep.subr.bf16.mxu0 %v6549_v44 }
 0xd59   :  { %5243 = vmatpush3.bf16.msra.mxu0 %v5833_v5 }
 0xdef   :  { %v2611_v17 = vpop.f32.mrb[28].mxu0 }
 0xdf0   :  { %v2612_v18 = vadd.f32 %v6376_v33, %v2611_v17  ;;  %v4231_v25 = vpop.f32.mrb[29].mxu0 }
 0xdf2   :  { %5411 = vtanh.f32 %v2612_v18 }
 0xdfc   :  { %v5412_v26 = vpop.eup %5411 }
 0xdfd   :  { %4265 = vmatmul.mubr.f32.vlgmr.msra.gmra.mrb[34].mxu1 %v5412_v26 }
 0xdfe   :  { %5198 = vmatpush3.bf16.msra.mxu1 %v5730_v41  ;;  %4299 = vmatprep.mubr.msk.f32.mxu1 %vm5581_vm0, %v6548_v39 }
 0xdff   :  { %5199 = vmatprep.subr.bf16.mxu1 %v6549_v44 }
 0xe02   :  { %5201 = vmatpush3.bf16.msra.mxu1 %v5740_v51 }
 0xe03   :  { %5202 = vmatprep.subr.bf16.mxu1 %v6549_v44 }
 0xe06   :  { %5204 = vmatpush3.bf16.msra.mxu1 %v5751_v61 }
 0xe07   :  { %5205 = vmatprep.subr.bf16.mxu1 %v6549_v44 }
 0xe0a   :  { %5207 = vmatpush3.bf16.msra.mxu1 %v5762_v10 }
 0xe0b   :  { %5208 = vmatprep.subr.bf16.mxu1 %v6549_v44 }
 0xe0e   :  { %5210 = vmatpush3.bf16.msra.mxu1 %v5773_v20 }
 0xe0f   :  { %v2759_v34 = vpop.f32.mrb[14].mxu0  ;;  %5211 = vmatprep.subr.bf16.mxu1 %v6549_v44 }
 0xe10   :  { %v2761_v35 = vpop.f32.mrb[15].mxu0  ;;  %v5297_v41 = vadd.f32 %v6561_v40, %v2759_v34 }
 0xe11   :  { %v5299_v61 = vadd.f32 %v5880_v62, %v2761_v35  ;;  %v3054_v62 = vld [vmem:[%s6531_s7] ss:$0 sm:$0xff] }
 0xe12   :  { %5213 = vmatpush3.bf16.msra.mxu1 %v5784_v24  ;;  %v3052_v56 = vmul.f32 -1.442695, %v5297_v41 }
 0xe13   :  { %5214 = vmatprep.subr.bf16.mxu1 %v6549_v44  ;;  %v3053_v2 = vmul.f32 -1.442695, %v5299_v61 }
 0xe14   :  { %5413 = vpow2.f32 %v3052_v56 }
 0xe15   :  { %5415 = vpow2.f32 %v3053_v2 }
 0xe16   :  { %5216 = vmatpush3.bf16.msra.mxu1 %v5791_v29 }
 0xe17   :  { %5217 = vmatprep.subr.bf16.mxu1 %v6549_v44 }
 0xe1a   :  { %5219 = vmatpush3.bf16.msra.mxu1 %v5798_v32 }
 0xe1b   :  { %5244 = vmatprep.subr.bf16.mxu1 %v6549_v44 }
 0xe1d   :  { %4300 = vmatmul.mubr.f32.vlgmr.msra.gmra.mrb[36].mxu1 %v6425_v16 }
 0xe1e   :  { %5246 = vmatpush3.bf16.msra.mxu1 %v5838_v11  ;;  %4369 = vmatprep.mubr.msk.f32.mxu1 %vm5581_vm0, %v6548_v39  ;;  %v5414_v4 = vpop.eup %5413 }
 0xe1f   :  { %5247 = vmatprep.subr.bf16.mxu1 %v6549_v44  ;;  %v2838_v10 = vadd.f32 1.0, %v5414_v4  ;;  %v5416_v13 = vpop.eup %5415 }
 0xe20   :  { %v2845_v15 = vadd.f32 1.0, %v5416_v13 }
 0xe21   :  { %5417 = vrcp.f32 %v2838_v10 }
 0xe22   :  { %5249 = vmatpush3.bf16.msra.mxu1 %v5841_v14  ;;  %5419 = vrcp.f32 %v2845_v15 }
 0xe23   :  { %5250 = vmatprep.subr.bf16.mxu1 %v6549_v44 }
 0xe26   :  { %5252 = vmatpush3.bf16.msra.mxu1 %v5845_v21 }
 0xe27   :  { %5253 = vmatprep.subr.bf16.mxu1 %v6549_v44 }
 0xe2a   :  { %5255 = vmatpush3.bf16.msra.mxu1 %v5849_v30 }
 0xe2b   :  { %5256 = vmatprep.subr.bf16.mxu1 %v6549_v44  ;;  %v5418_v29 = vpop.eup %5417 }
 0xe2c   :  { %v5420_v47 = vpop.eup %5419 }
 0xe2d   :  { %v2851_v50 = vsub.f32 1.0, %v5420_v47  ;;  %v2853_v63 = vmul.f32 %v5420_v47, %v6425_v16 }
 0xe2e   :  { %5258 = vmatpush3.bf16.msra.mxu1 %v5853_v38 }
 0xe2f   :  { %5259 = vmatprep.subr.bf16.mxu1 %v6549_v44 }
 0xe32   :  { %5261 = vmatpush3.bf16.msra.mxu1 %v5926_v27 }
 0xe33   :  { %5262 = vmatprep.subr.bf16.mxu1 %v6549_v44 }
 0xe36   :  { %5264 = vmatpush3.bf16.msra.mxu1 %v5930_v22 }
 0xe37   :  { %5265 = vmatprep.subr.bf16.mxu1 %v6549_v44 }
 0xe3a   :  { %5267 = vmatpush3.bf16.msra.mxu1 %v6555_v31 }
 0xed0   :  { %v2682_v45 = vpop.f32.mrb[34].mxu1 }
 0xed1   :  { %v2686_v51 = vmax.f32 %v6563_v46, %v2682_v45  ;;  %v4266_v55 = vpop.f32.mrb[35].mxu1 }
 0xef0   :  { %v2830_v20 = vpop.f32.mrb[36].mxu1 }
 0xef1   :  { %v2831_v23 = vadd.f32 %v2830_v20, %v5884_v43  ;;  %v4301_v24 = vpop.f32.mrb[37].mxu1 }
 0xef3   :  { %v2848_v32 = vmul.f32 %v5418_v29, %v2831_v23 }
 0xef5   :  { %v2849_v42 = vadd.f32 %v2848_v32, %v6564_v37 }
 0xef7   :  { %5421 = vtanh.f32 %v2849_v42 }
 0xf01   :  { %v5422_v54 = vpop.eup %5421 }
 0xf02   :  { %v2852_v60 = vmul.f32 %v5422_v54, %v2851_v50 }
 0xf04   :  { %v2854_v5 = vadd.f32 %v2853_v63, %v2852_v60 }
 0xf06   :  { %4335 = vmatmul.mubr.f32.vlgmr.msra.gmra.mrb[30].mxu0 %v2854_v5 }
 0xfd9   :  { %v2921_v11 = vpop.f32.mrb[30].mxu0 }
 0xfda   :  { %v2922_v14 = vadd.f32 %v6376_v33, %v2921_v11  ;;  %v4336_v21 = vpop.f32.mrb[31].mxu0 }
 0xfdc   :  { %5423 = vtanh.f32 %v2922_v14 }
 0xfe6   :  { %v5424_v30 = vpop.eup %5423 }
 0xfe7   :  { %4370 = vmatmul.mubr.f32.vlgmr.msra.gmra.mrb[38].mxu1 %v5424_v30 }
0x10ba   :  { %v2992_v38 = vpop.f32.mrb[38].mxu1 }
0x10bb   :  { %v2996_v43 = vmax.f32 %v2686_v51, %v2992_v38  ;;  %v4371_v39 = vpop.f32.mrb[39].mxu1 }
0x10bd   :  { %v3004_v44 = vadd.f32 %v3054_v62, %v2996_v43 }
0x10bf   :  { %v3055_v27 = vmul.f32 -1.442695, %v3004_v44 }
0x10c1   :  { %5425 = vpow2.f32 %v3055_v27 }
0x10cb   :  { %v5426_v22 = vpop.eup %5425 }
0x10cc   :  { %v3008_v31 = vadd.f32 1.0, %v5426_v22 }
0x10ce   :  { %5427 = vrcp.f32 %v3008_v31 }
0x10d8   :  { %v5428_v36 = vpop.eup %5427 }
0x10d9   :  { %3011 = vst [vmem:[#allocation12] sm:$0xff] %v5428_v36 }
0x10da   :  { %5551 = shalt.err (!%p5548_p2)
}
0x10db   :  { %s5552_s12 = scalar_lea.hbm %s6532_s8, 128 }
0x10dc   :  { %p5553_p3 = scmp.ne.s32.totalorder %s6532_s8, %s5552_s12  ;;  %p5556_p4 = scmp.lt.u32.totalorder %s5552_s12, %s6532_s8 }
0x10de   :  { %p5558_p5 = pnand %p5556_p4, %p5553_p3 }
0x10e0   :  { %5561 = shalt.err (!%p5558_p5)
}
0x10e1   :  { %3021 = dma.vmem_to_hbm [thread:$0]  %s3019_s1, 128, %s6532_s8, [#allocation5]  }
0x10e2   :  { %5568 = dma.done.wait [#allocation5], 128  }
0x10e3   :  { %5569 = vsyncadd [#allocation5], 4294967168 }
0x10e4   :  { %3025 = vsyncpa [#allocation4], 1 }
0x10e5   :  { %3026 = vsyncpa [#allocation7], 1 }
0x10e6   :  { %3027 = vsyncpa [#allocation10], 1 }
0x10e7   :  { %3028 = vsyncpa [#allocation5], 1 }

</bundles_post_ra>
